<compile_context>
chip_gen: v7x
topology: tpu7x:2x2x1
jax: 0.10.0
libtpu: 0.0.40
codegen_flags: <defaults>
</compile_context>

<pallas_src>
import math
import jax
import jax.numpy as jnp
from jax import lax
from jax.experimental import pallas as pl
from jax.experimental.pallas import tpu as pltpu

HIDDEN = 32
DEPTH = 2
NUM_HEADS = 2
HEAD_DIM = HIDDEN // NUM_HEADS
EPS = 1e-5  # DenseTNT LayerNorm eps

# packed small-parameter layout (rows of the (VEC_ROWS, 128) "vec" array):
#   rows 0:2            -> MLP biases        (lanes 0:H)
#   rows 2:4            -> MLP LN gamma      (lanes 0:H)
#   rows 4:6            -> MLP LN beta       (lanes 0:H)
#   rows 6:6+D          -> fused QKV biases  (lanes 0:3H, Q part pre-scaled)
#   rows 6+D:6+2D       -> layers_2 LN gamma (lanes 0:H)
#   rows 6+2D:6+3D      -> layers_2 LN beta  (lanes 0:H)
VEC_ROWS = ((6 + 3 * DEPTH + 7) // 8) * 8


# ----------------------------- kernel helpers -------------------------------
def _layer_norm(x, gamma, beta):
    u = jnp.mean(x, axis=-1, keepdims=True)
    s = jnp.mean((x - u) ** 2, axis=-1, keepdims=True)
    xn = (x - u) * lax.rsqrt(s + EPS)          # rsqrt -> EUP slot
    return gamma * xn + beta


# ------------------------------ fused kernel ---------------------------------
def fused_forward_kernel(lengths_ref,          # SMEM (B,) int32
                         x_ref,                # VMEM (B*N, H)
                         mlp_w_ref,            # VMEM (2, H, H)
                         qkv_w_ref,            # VMEM (DEPTH, H, 3H)  (Q pre-scaled)
                         vec_ref,              # VMEM (VEC_ROWS, 128) packed vectors
                         out_ref):             # VMEM (B*N + B, H): hidden | pooled
    BN, H = x_ref.shape
    B = lengths_ref.shape[0]
    N = BN // B
    S = NUM_HEADS * BN            # stacked attention rows
    NBLK = NUM_HEADS * B          # number of (head, batch) blocks of size N

    # activations resident in vregs for the whole forward
    h = x_ref[...]

    # ---- block-diagonal attention bias, built ONCE from SMEM lengths --------
    # rows/cols ordered (head, batch, n); block id = head*B + batch.
    # Avoid vector int div/mod: block ids via summed comparisons (N static).
    r = lax.broadcasted_iota(jnp.int32, (S, S), 0)
    c = lax.broadcasted_iota(jnp.int32, (S, S), 1)
    blk_r = jnp.zeros((S, S), jnp.int32)
    blk_c = jnp.zeros((S, S), jnp.int32)
    for t in range(1, NBLK):
        blk_r = blk_r + (r >= t * N).astype(jnp.int32)
        blk_c = blk_c + (c >= t * N).astype(jnp.int32)
    same_block = blk_r == blk_c
    pos_r = r - blk_r * N
    pos_c = c - blk_c * N
    Lr = jnp.zeros((S, S), jnp.int32)
    for blk in range(NBLK):
        Lr = jnp.where(blk_r == blk, lengths_ref[blk % B], Lr)
    row_valid = pos_r < Lr
    col_valid = pos_c < Lr
    # same-block & col valid -> 0 ; same-block & row padded -> 0 (the original
    # module's uniform -1e4 bias cancels in its softmax, so the padded-row
    # softmax is over raw within-block scores); everything else -> -1e4.
    keep = same_block & (col_valid | jnp.logical_not(row_valid))
    bias = jnp.where(keep, 0.0, -10000.0)

    # ---- two MLP stages: Linear -> LayerNorm -> ReLU ------------------------
    for s in range(2):
        z = jnp.dot(h, mlp_w_ref[s], preferred_element_type=jnp.float32) \
            + vec_ref[s:s + 1, :H]
        z = _layer_norm(z, vec_ref[2 + s:3 + s, :H], vec_ref[4 + s:5 + s, :H])
        h = jnp.maximum(z, 0.0)

    # ---- DEPTH x (2-head attention -> relu -> residual -> LayerNorm) --------
    H3 = 3 * H
    for d in range(DEPTH):
        # fused QKV projection: one (B*N, H) x (H, 3H) matmul, bias from vec
        qkv = jnp.dot(h, qkv_w_ref[d], preferred_element_type=jnp.float32) \
              + vec_ref[6 + d:7 + d, :H3]
        # stack heads along rows -> (NUM_HEADS*B*N, HEAD_DIM), kept in vregs
        q_st = jnp.concatenate(
            [qkv[:, hd * HEAD_DIM:(hd + 1) * HEAD_DIM] for hd in range(NUM_HEADS)], axis=0)
        k_st = jnp.concatenate(
            [qkv[:, H + hd * HEAD_DIM:H + (hd + 1) * HEAD_DIM] for hd in range(NUM_HEADS)], axis=0)
        v_st = jnp.concatenate(
            [qkv[:, 2 * H + hd * HEAD_DIM:2 * H + (hd + 1) * HEAD_DIM] for hd in range(NUM_HEADS)], axis=0)

        # ONE score matmul (K transpose folded into the contraction) + bias
        scores = lax.dot_general(q_st, k_st, (((1,), (1,)), ((), ())),
                                 preferred_element_type=jnp.float32) + bias
        # ONE softmax chain over the whole (S, S) block
        m = jnp.max(scores, axis=-1, keepdims=True)
        p = jnp.exp(scores - m)
        p = p * (1.0 / jnp.sum(p, axis=-1, keepdims=True))   # exact, (S,1) only
        # ONE PV matmul; un-stack heads back to lanes (no VMEM round-trip)
        ctx_st = jnp.dot(p, v_st, preferred_element_type=jnp.float32)  # (S, HD)
        ctx = jnp.concatenate(
            [ctx_st[hd * BN:(hd + 1) * BN, :] for hd in range(NUM_HEADS)], axis=1)

        h = jnp.maximum(ctx, 0.0) + h                                  # relu + residual
        h = _layer_norm(h, vec_ref[6 + DEPTH + d:7 + DEPTH + d, :H],
                        vec_ref[6 + 2 * DEPTH + d:7 + 2 * DEPTH + d, :H])

    # ---- single output slab: [hidden states ; per-batch max over dim=1] -----
    pooled_rows = [jnp.max(h[b * N:(b + 1) * N, :], axis=0, keepdims=True)
                   for b in range(B)]
    out_ref[...] = jnp.concatenate([h] + pooled_rows, axis=0)


def run_fused_forward(hidden_flat, lengths_arr, params):
    # TODO(synk): for production workloads with many polyline groups per step,
    # add a leading ("parallel",) grid axis over groups (or stack several
    # NewSubGraph calls into one invocation) so both v7x TensorCores are used
    # and the per-call launch/DMA overhead is amortized.
    BN, H = hidden_flat.shape
    B = lengths_arr.shape[0]
    vmem = pl.BlockSpec(memory_space=pltpu.MemorySpace.VMEM)
    smem = pl.BlockSpec(memory_space=pltpu.MemorySpace.SMEM)
    slab = pl.pallas_call(
        fused_forward_kernel,
        out_shape=jax.ShapeDtypeStruct((BN + B, H), jnp.float32),
        in_specs=[smem, vmem, vmem, vmem, vmem],
        out_specs=vmem,
    )(lengths_arr, hidden_flat, params["mlp_w"], params["qkv_w"], params["vec"])
    return slab[:BN], slab[BN:]


# ------------------------------ parameter init -------------------------------
def init_params(key, hidden=HIDDEN, depth=DEPTH):
    def linear(k, fan_in, fan_out):
        k1, k2 = jax.random.split(k)
        bound = 1.0 / math.sqrt(fan_in)
        w = jax.random.uniform(k1, (fan_in, fan_out), jnp.float32, -bound, bound)
        b = jax.random.uniform(k2, (fan_out,), jnp.float32, -bound, bound)
        return w, b

    keys = jax.random.split(key, 2 + 3 * depth)
    scale = 1.0 / math.sqrt(hidden // NUM_HEADS)
    H = hidden

    mlp_w, mlp_b = [], []
    for s in range(2):
        w, b = linear(keys[s], H, H)
        mlp_w.append(w)
        mlp_b.append(b)

    qkv_w, qkv_b = [], []
    for d in range(depth):
        wq, bq = linear(keys[2 + 3 * d], H, H)
        wk, bk = linear(keys[3 + 3 * d], H, H)
        wv, bv = linear(keys[4 + 3 * d], H, H)
        # pre-bake the 1/sqrt(head_dim) score scale into Q weight AND bias
        qkv_w.append(jnp.concatenate([wq * scale, wk, wv], axis=1))   # (H, 3H)
        qkv_b.append(jnp.concatenate([bq * scale, bk, bv], axis=0))   # (3H,)

    # pack all small vectors into one 128-lane-padded array (single DMA)
    vec = jnp.zeros((VEC_ROWS, 128), jnp.float32)
    vec = vec.at[0:2, :H].set(jnp.stack(mlp_b))                       # MLP bias
    vec = vec.at[2:4, :H].set(1.0)                                    # MLP LN gamma
    # rows 4:6 (MLP LN beta) stay zero
    vec = vec.at[6:6 + depth, :3 * H].set(jnp.stack(qkv_b))           # QKV bias
    vec = vec.at[6 + depth:6 + 2 * depth, :H].set(1.0)                # layers_2 gamma
    # rows 6+2D:6+3D (layers_2 beta) stay zero

    return {"mlp_w": jnp.stack(mlp_w),     # (2, H, H)
            "qkv_w": jnp.stack(qkv_w),     # (DEPTH, H, 3H)
            "vec": vec}                    # (VEC_ROWS, 128)


# ------------------------------ module forward -------------------------------
def new_sub_graph_forward(input_list, params):
    lengths = [int(t.shape[0]) for t in input_list]
    assert all(l > 0 for l in lengths)
    B = len(input_list)
    N = max(lengths)
    H = input_list[0].shape[1]

    # utils.merge_tensors: zero-pad to [B, N, H] (free layout reshape to (B*N, H))
    hidden = jnp.zeros((B, N, H), jnp.float32)
    for i, t in enumerate(input_list):
        hidden = hidden.at[i, : t.shape[0]].set(t)
    lengths_arr = jnp.array(lengths, dtype=jnp.int32)

    flat, pooled = run_fused_forward(hidden.reshape(B * N, H), lengths_arr, params)
    out = flat.reshape(B, N, H)

    # torch.cat(utils.de_merge_tensors(hidden_states, lengths))
    demerged = jnp.concatenate([out[i, : lengths[i]] for i in range(B)], axis=0)
    return pooled, demerged, out


# ------------------------- pure-JAX reference (check) -------------------------
def _reference_forward(hidden, lengths_arr, params):
    B, N, H = hidden.shape
    mlp_w, qkv_w, vec = params["mlp_w"], params["qkv_w"], params["vec"]
    valid = (jnp.arange(N)[None, :, None] < lengths_arr[:, None, None]) & \
            (jnp.arange(N)[None, None, :] < lengths_arr[:, None, None])
    bias = jnp.where(valid, 0.0, -10000.0)                     # (B, N, N)
    h = hidden
    for s in range(2):
        z = h @ mlp_w[s] + vec[s, :H]
        u = z.mean(-1, keepdims=True)
        var = ((z - u) ** 2).mean(-1, keepdims=True)
        z = (z - u) / jnp.sqrt(var + EPS) * vec[2 + s, :H] + vec[4 + s, :H]
        h = jnp.maximum(z, 0.0)
    for d in range(DEPTH):
        qkv = h @ qkv_w[d] + vec[6 + d, :3 * H]
        q, k, v = qkv[..., :H], qkv[..., H:2 * H], qkv[..., 2 * H:]
        qh = q.reshape(B, N, NUM_HEADS, HEAD_DIM).transpose(0, 2, 1, 3)
        kh = k.reshape(B, N, NUM_HEADS, HEAD_DIM).transpose(0, 2, 1, 3)
        vh = v.reshape(B, N, NUM_HEADS, HEAD_DIM).transpose(0, 2, 1, 3)
        sc = jnp.einsum('bhnd,bhmd->bhnm', qh, kh) + bias[:, None]  # scale pre-baked
        p = jax.nn.softmax(sc, axis=-1)
        ctx = jnp.einsum('bhnm,bhmd->bhnd', p, vh).transpose(0, 2, 1, 3).reshape(B, N, H)
        h = jnp.maximum(ctx, 0.0) + h
        u = h.mean(-1, keepdims=True)
        var = ((h - u) ** 2).mean(-1, keepdims=True)
        h = (h - u) / jnp.sqrt(var + EPS) * vec[6 + DEPTH + d, :H] + vec[6 + 2 * DEPTH + d, :H]
    return h, jnp.max(h, axis=1)


# ----------------------------------- main ------------------------------------
if __name__ == "__main__":
    key = jax.random.PRNGKey(0)
    k_params, k_in0, k_in1 = jax.random.split(key, 3)

    params = init_params(k_params)

    # batch of 2 polylines with different vector counts (max_vector_num = 8)
    input_list = [
        jax.random.normal(k_in0, (5, HIDDEN), jnp.float32),
        jax.random.normal(k_in1, (8, HIDDEN), jnp.float32),
    ]
    lengths = [t.shape[0] for t in input_list]

    pooled, demerged, out = new_sub_graph_forward(input_list, params)
    pooled = jax.block_until_ready(pooled)
    demerged = jax.block_until_ready(demerged)
    out = jax.block_until_ready(out)

    assert pooled.shape == (2, HIDDEN)
    assert demerged.shape == (5 + 8, HIDDEN)
    assert bool(jnp.all(jnp.isfinite(pooled))) and bool(jnp.all(jnp.isfinite(demerged)))

    # pure-JAX reference check
    hidden0 = jnp.zeros((2, 8, HIDDEN), jnp.float32)
    for i, t in enumerate(input_list):
        hidden0 = hidden0.at[i, : t.shape[0]].set(t)
    ref_h, ref_pooled = _reference_forward(hidden0, jnp.array(lengths, jnp.int32), params)
    assert jnp.allclose(out, ref_h, rtol=1e-2, atol=1e-2)
    assert jnp.allclose(pooled, ref_pooled, rtol=1e-2, atol=1e-2)

    print("KERNEL_OK")
</pallas_src>

<mosaic_0001>
module attributes {stable_mosaic.version = 11 : i64} {
  func.func @fused_forward_kernel(%arg0: memref<2xi32, #tpu.memory_space<smem>>, %arg1: memref<16x32xf32, #tpu.memory_space<vmem>>, %arg2: memref<2x32x32xf32, #tpu.memory_space<vmem>>, %arg3: memref<2x32x96xf32, #tpu.memory_space<vmem>>, %arg4: memref<16x128xf32, #tpu.memory_space<vmem>>, %arg5: memref<18x32xf32, #tpu.memory_space<vmem>>) attributes {dimension_semantics = [], scalar_prefetch = 0 : i64, scratch_operands = 0 : i64, tpu.core_type = #tpu.core_type<tc>} {
    %c0 = arith.constant 0 : index
    %c0_0 = arith.constant 0 : index
    %0 = vector.load %arg1[%c0, %c0_0] : memref<16x32xf32, #tpu.memory_space<vmem>>, vector<16x32xf32>
    %1 = tpu.iota {dimensions = array<i32: 0>} : vector<32x32xi32>
    %2 = tpu.iota {dimensions = array<i32: 1>} : vector<32x32xi32>
    %c0_i32 = arith.constant 0 : i32
    %3 = vector.broadcast %c0_i32 : i32 to vector<32x32xi32>
    %c0_i32_1 = arith.constant 0 : i32
    %4 = vector.broadcast %c0_i32_1 : i32 to vector<32x32xi32>
    %c8_i32 = arith.constant 8 : i32
    %5 = vector.broadcast %c8_i32 : i32 to vector<32x32xi32>
    %6 = arith.cmpi sge, %1, %5 : vector<32x32xi32>
    %7 = arith.extui %6 : vector<32x32xi1> to vector<32x32xi32>
    %8 = arith.addi %3, %7 : vector<32x32xi32>
    %c8_i32_2 = arith.constant 8 : i32
    %9 = vector.broadcast %c8_i32_2 : i32 to vector<32x32xi32>
    %10 = arith.cmpi sge, %2, %9 : vector<32x32xi32>
    %11 = arith.extui %10 : vector<32x32xi1> to vector<32x32xi32>
    %12 = arith.addi %4, %11 : vector<32x32xi32>
    %c16_i32 = arith.constant 16 : i32
    %13 = vector.broadcast %c16_i32 : i32 to vector<32x32xi32>
    %14 = arith.cmpi sge, %1, %13 : vector<32x32xi32>
    %15 = arith.extui %14 : vector<32x32xi1> to vector<32x32xi32>
    %16 = arith.addi %8, %15 : vector<32x32xi32>
    %c16_i32_3 = arith.constant 16 : i32
    %17 = vector.broadcast %c16_i32_3 : i32 to vector<32x32xi32>
    %18 = arith.cmpi sge, %2, %17 : vector<32x32xi32>
    %19 = arith.extui %18 : vector<32x32xi1> to vector<32x32xi32>
    %20 = arith.addi %12, %19 : vector<32x32xi32>
    %c24_i32 = arith.constant 24 : i32
    %21 = vector.broadcast %c24_i32 : i32 to vector<32x32xi32>
    %22 = arith.cmpi sge, %1, %21 : vector<32x32xi32>
    %23 = arith.extui %22 : vector<32x32xi1> to vector<32x32xi32>
    %24 = arith.addi %16, %23 : vector<32x32xi32>
    %c24_i32_4 = arith.constant 24 : i32
    %25 = vector.broadcast %c24_i32_4 : i32 to vector<32x32xi32>
    %26 = arith.cmpi sge, %2, %25 : vector<32x32xi32>
    %27 = arith.extui %26 : vector<32x32xi1> to vector<32x32xi32>
    %28 = arith.addi %20, %27 : vector<32x32xi32>
    %29 = arith.cmpi eq, %24, %28 : vector<32x32xi32>
    %c8_i32_5 = arith.constant 8 : i32
    %30 = vector.broadcast %c8_i32_5 : i32 to vector<32x32xi32>
    %31 = arith.muli %24, %30 : vector<32x32xi32>
    %32 = arith.subi %1, %31 : vector<32x32xi32>
    %c8_i32_6 = arith.constant 8 : i32
    %33 = vector.broadcast %c8_i32_6 : i32 to vector<32x32xi32>
    %34 = arith.muli %28, %33 : vector<32x32xi32>
    %35 = arith.subi %2, %34 : vector<32x32xi32>
    %c0_i32_7 = arith.constant 0 : i32
    %36 = vector.broadcast %c0_i32_7 : i32 to vector<32x32xi32>
    %c0_i32_8 = arith.constant 0 : i32
    %37 = vector.broadcast %c0_i32_8 : i32 to vector<32x32xi32>
    %38 = arith.cmpi eq, %24, %37 : vector<32x32xi32>
    %c0_9 = arith.constant 0 : index
    %39 = memref.load %arg0[%c0_9] : memref<2xi32, #tpu.memory_space<smem>>
    %40 = vector.broadcast %39 : i32 to vector<32x32xi32>
    %41 = arith.select %38, %40, %36 : vector<32x32xi1>, vector<32x32xi32>
    %c1_i32 = arith.constant 1 : i32
    %42 = vector.broadcast %c1_i32 : i32 to vector<32x32xi32>
    %43 = arith.cmpi eq, %24, %42 : vector<32x32xi32>
    %c1 = arith.constant 1 : index
    %44 = memref.load %arg0[%c1] : memref<2xi32, #tpu.memory_space<smem>>
    %45 = vector.broadcast %44 : i32 to vector<32x32xi32>
    %46 = arith.select %43, %45, %41 : vector<32x32xi1>, vector<32x32xi32>
    %c2_i32 = arith.constant 2 : i32
    %47 = vector.broadcast %c2_i32 : i32 to vector<32x32xi32>
    %48 = arith.cmpi eq, %24, %47 : vector<32x32xi32>
    %c0_10 = arith.constant 0 : index
    %49 = memref.load %arg0[%c0_10] : memref<2xi32, #tpu.memory_space<smem>>
    %50 = vector.broadcast %49 : i32 to vector<32x32xi32>
    %51 = arith.select %48, %50, %46 : vector<32x32xi1>, vector<32x32xi32>
    %c3_i32 = arith.constant 3 : i32
    %52 = vector.broadcast %c3_i32 : i32 to vector<32x32xi32>
    %53 = arith.cmpi eq, %24, %52 : vector<32x32xi32>
    %c1_11 = arith.constant 1 : index
    %54 = memref.load %arg0[%c1_11] : memref<2xi32, #tpu.memory_space<smem>>
    %55 = vector.broadcast %54 : i32 to vector<32x32xi32>
    %56 = arith.select %53, %55, %51 : vector<32x32xi1>, vector<32x32xi32>
    %57 = arith.cmpi slt, %32, %56 : vector<32x32xi32>
    %58 = arith.cmpi slt, %35, %56 : vector<32x32xi32>
    %cst = arith.constant dense<true> : vector<32x32xi1>
    %59 = arith.xori %57, %cst : vector<32x32xi1>
    %60 = arith.ori %58, %59 : vector<32x32xi1>
    %61 = arith.andi %29, %60 : vector<32x32xi1>
    %cst_12 = arith.constant 0.000000e+00 : f32
    %cst_13 = arith.constant -1.000000e+04 : f32
    %62 = vector.broadcast %cst_12 : f32 to vector<32x32xf32>
    %63 = vector.broadcast %cst_13 : f32 to vector<32x32xf32>
    %64 = arith.select %61, %62, %63 : vector<32x32xi1>, vector<32x32xf32>
    %c0_14 = arith.constant 0 : index
    %c0_15 = arith.constant 0 : index
    %c0_16 = arith.constant 0 : index
    %65 = vector.load %arg2[%c0_14, %c0_15, %c0_16] : memref<2x32x32xf32, #tpu.memory_space<vmem>>, vector<1x32x32xf32>
    %66 = vector.shape_cast %65 : vector<1x32x32xf32> to vector<32x32xf32>
    %cst_17 = arith.constant dense<0.000000e+00> : vector<16x32xf32>
    %67 = tpu.matmul %0, %66, %cst_17 {dimension_numbers = #tpu.dot_dimension_numbers<[1], [0], [0], [1], [0, 0, 1, 1], [], []>} : vector<16x32xf32>, vector<32x32xf32>, vector<16x32xf32> -> vector<16x32xf32>
    %c0_18 = arith.constant 0 : index
    %c0_19 = arith.constant 0 : index
    %68 = vector.load %arg4[%c0_18, %c0_19] : memref<16x128xf32, #tpu.memory_space<vmem>>, vector<1x32xf32>
    %69 = vector.broadcast %68 : vector<1x32xf32> to vector<16x32xf32>
    %70 = arith.addf %67, %69 : vector<16x32xf32>
    %c2 = arith.constant 2 : index
    %c0_20 = arith.constant 0 : index
    %71 = vector.load %arg4[%c2, %c0_20] : memref<16x128xf32, #tpu.memory_space<vmem>>, vector<1x32xf32>
    %c4 = arith.constant 4 : index
    %c0_21 = arith.constant 0 : index
    %72 = vector.load %arg4[%c4, %c0_21] : memref<16x128xf32, #tpu.memory_space<vmem>>, vector<1x32xf32>
    %cst_22 = arith.constant dense<0.000000e+00> : vector<16xf32>
    %73 = vector.multi_reduction <add>, %70, %cst_22 [1] : vector<16x32xf32> to vector<16xf32>
    %74 = vector.shape_cast %73 : vector<16xf32> to vector<16x1xf32>
    %cst_23 = arith.constant 3.200000e+01 : f32
    %75 = vector.broadcast %cst_23 : f32 to vector<16x1xf32>
    %76 = arith.divf %74, %75 : vector<16x1xf32>
    %77 = vector.broadcast %76 : vector<16x1xf32> to vector<16x32xf32>
    %78 = arith.subf %70, %77 : vector<16x32xf32>
    %79 = arith.mulf %78, %78 : vector<16x32xf32>
    %cst_24 = arith.constant dense<0.000000e+00> : vector<16xf32>
    %80 = vector.multi_reduction <add>, %79, %cst_24 [1] : vector<16x32xf32> to vector<16xf32>
    %81 = vector.shape_cast %80 : vector<16xf32> to vector<16x1xf32>
    %cst_25 = arith.constant 3.200000e+01 : f32
    %82 = vector.broadcast %cst_25 : f32 to vector<16x1xf32>
    %83 = arith.divf %81, %82 : vector<16x1xf32>
    %84 = vector.broadcast %76 : vector<16x1xf32> to vector<16x32xf32>
    %85 = arith.subf %70, %84 : vector<16x32xf32>
    %cst_26 = arith.constant 9.99999974E-6 : f32
    %86 = vector.broadcast %cst_26 : f32 to vector<16x1xf32>
    %87 = arith.addf %83, %86 : vector<16x1xf32>
    %88 = math.rsqrt %87 : vector<16x1xf32>
    %89 = vector.broadcast %88 : vector<16x1xf32> to vector<16x32xf32>
    %90 = arith.mulf %85, %89 : vector<16x32xf32>
    %91 = vector.broadcast %71 : vector<1x32xf32> to vector<16x32xf32>
    %92 = arith.mulf %91, %90 : vector<16x32xf32>
    %93 = vector.broadcast %72 : vector<1x32xf32> to vector<16x32xf32>
    %94 = arith.addf %92, %93 : vector<16x32xf32>
    %cst_27 = arith.constant 0.000000e+00 : f32
    %95 = vector.broadcast %cst_27 : f32 to vector<16x32xf32>
    %96 = arith.maximumf %94, %95 : vector<16x32xf32>
    %c1_28 = arith.constant 1 : index
    %c0_29 = arith.constant 0 : index
    %c0_30 = arith.constant 0 : index
    %97 = vector.load %arg2[%c1_28, %c0_29, %c0_30] : memref<2x32x32xf32, #tpu.memory_space<vmem>>, vector<1x32x32xf32>
    %98 = vector.shape_cast %97 : vector<1x32x32xf32> to vector<32x32xf32>
    %cst_31 = arith.constant dense<0.000000e+00> : vector<16x32xf32>
    %99 = tpu.matmul %96, %98, %cst_31 {dimension_numbers = #tpu.dot_dimension_numbers<[1], [0], [0], [1], [0, 0, 1, 1], [], []>} : vector<16x32xf32>, vector<32x32xf32>, vector<16x32xf32> -> vector<16x32xf32>
    %c1_32 = arith.constant 1 : index
    %c0_33 = arith.constant 0 : index
    %100 = vector.load %arg4[%c1_32, %c0_33] : memref<16x128xf32, #tpu.memory_space<vmem>>, vector<1x32xf32>
    %101 = vector.broadcast %100 : vector<1x32xf32> to vector<16x32xf32>
    %102 = arith.addf %99, %101 : vector<16x32xf32>
    %c3 = arith.constant 3 : index
    %c0_34 = arith.constant 0 : index
    %103 = vector.load %arg4[%c3, %c0_34] : memref<16x128xf32, #tpu.memory_space<vmem>>, vector<1x32xf32>
    %c5 = arith.constant 5 : index
    %c0_35 = arith.constant 0 : index
    %104 = vector.load %arg4[%c5, %c0_35] : memref<16x128xf32, #tpu.memory_space<vmem>>, vector<1x32xf32>
    %cst_36 = arith.constant dense<0.000000e+00> : vector<16xf32>
    %105 = vector.multi_reduction <add>, %102, %cst_36 [1] : vector<16x32xf32> to vector<16xf32>
    %106 = vector.shape_cast %105 : vector<16xf32> to vector<16x1xf32>
    %cst_37 = arith.constant 3.200000e+01 : f32
    %107 = vector.broadcast %cst_37 : f32 to vector<16x1xf32>
    %108 = arith.divf %106, %107 : vector<16x1xf32>
    %109 = vector.broadcast %108 : vector<16x1xf32> to vector<16x32xf32>
    %110 = arith.subf %102, %109 : vector<16x32xf32>
    %111 = arith.mulf %110, %110 : vector<16x32xf32>
    %cst_38 = arith.constant dense<0.000000e+00> : vector<16xf32>
    %112 = vector.multi_reduction <add>, %111, %cst_38 [1] : vector<16x32xf32> to vector<16xf32>
    %113 = vector.shape_cast %112 : vector<16xf32> to vector<16x1xf32>
    %cst_39 = arith.constant 3.200000e+01 : f32
    %114 = vector.broadcast %cst_39 : f32 to vector<16x1xf32>
    %115 = arith.divf %113, %114 : vector<16x1xf32>
    %116 = vector.broadcast %108 : vector<16x1xf32> to vector<16x32xf32>
    %117 = arith.subf %102, %116 : vector<16x32xf32>
    %cst_40 = arith.constant 9.99999974E-6 : f32
    %118 = vector.broadcast %cst_40 : f32 to vector<16x1xf32>
    %119 = arith.addf %115, %118 : vector<16x1xf32>
    %120 = math.rsqrt %119 : vector<16x1xf32>
    %121 = vector.broadcast %120 : vector<16x1xf32> to vector<16x32xf32>
    %122 = arith.mulf %117, %121 : vector<16x32xf32>
    %123 = vector.broadcast %103 : vector<1x32xf32> to vector<16x32xf32>
    %124 = arith.mulf %123, %122 : vector<16x32xf32>
    %125 = vector.broadcast %104 : vector<1x32xf32> to vector<16x32xf32>
    %126 = arith.addf %124, %125 : vector<16x32xf32>
    %cst_41 = arith.constant 0.000000e+00 : f32
    %127 = vector.broadcast %cst_41 : f32 to vector<16x32xf32>
    %128 = arith.maximumf %126, %127 : vector<16x32xf32>
    %c0_42 = arith.constant 0 : index
    %c0_43 = arith.constant 0 : index
    %c0_44 = arith.constant 0 : index
    %129 = vector.load %arg3[%c0_42, %c0_43, %c0_44] : memref<2x32x96xf32, #tpu.memory_space<vmem>>, vector<1x32x96xf32>
    %130 = vector.shape_cast %129 : vector<1x32x96xf32> to vector<32x96xf32>
    %cst_45 = arith.constant dense<0.000000e+00> : vector<16x96xf32>
    %131 = tpu.matmul %128, %130, %cst_45 {dimension_numbers = #tpu.dot_dimension_numbers<[1], [0], [0], [1], [0, 0, 1, 1], [], []>} : vector<16x32xf32>, vector<32x96xf32>, vector<16x96xf32> -> vector<16x96xf32>
    %c6 = arith.constant 6 : index
    %c0_46 = arith.constant 0 : index
    %132 = vector.load %arg4[%c6, %c0_46] : memref<16x128xf32, #tpu.memory_space<vmem>>, vector<1x96xf32>
    %133 = vector.broadcast %132 : vector<1x96xf32> to vector<16x96xf32>
    %134 = arith.addf %131, %133 : vector<16x96xf32>
    %135 = vector.extract_strided_slice %134 {offsets = [0, 0], sizes = [16, 16], strides = [1, 1]} : vector<16x96xf32> to vector<16x16xf32>
    %136 = vector.extract_strided_slice %134 {offsets = [0, 16], sizes = [16, 16], strides = [1, 1]} : vector<16x96xf32> to vector<16x16xf32>
    %137 = tpu.concatenate %135, %136 in 0 : vector<16x16xf32>, vector<16x16xf32> -> vector<32x16xf32>
    %138 = vector.extract_strided_slice %134 {offsets = [0, 32], sizes = [16, 16], strides = [1, 1]} : vector<16x96xf32> to vector<16x16xf32>
    %139 = vector.extract_strided_slice %134 {offsets = [0, 48], sizes = [16, 16], strides = [1, 1]} : vector<16x96xf32> to vector<16x16xf32>
    %140 = tpu.concatenate %138, %139 in 0 : vector<16x16xf32>, vector<16x16xf32> -> vector<32x16xf32>
    %141 = vector.extract_strided_slice %134 {offsets = [0, 64], sizes = [16, 16], strides = [1, 1]} : vector<16x96xf32> to vector<16x16xf32>
    %142 = vector.extract_strided_slice %134 {offsets = [0, 80], sizes = [16, 16], strides = [1, 1]} : vector<16x96xf32> to vector<16x16xf32>
    %143 = tpu.concatenate %141, %142 in 0 : vector<16x16xf32>, vector<16x16xf32> -> vector<32x16xf32>
    %cst_47 = arith.constant dense<0.000000e+00> : vector<32x32xf32>
    %144 = tpu.matmul %137, %140, %cst_47 {dimension_numbers = #tpu.dot_dimension_numbers<[1], [1], [0], [0], [0, 0, 1, 0], [], []>} : vector<32x16xf32>, vector<32x16xf32>, vector<32x32xf32> -> vector<32x32xf32>
    %145 = arith.addf %144, %64 : vector<32x32xf32>
    %cst_48 = arith.constant dense<0xFF800000> : vector<32xf32>
    %146 = vector.multi_reduction <maximumf>, %145, %cst_48 [1] : vector<32x32xf32> to vector<32xf32>
    %147 = vector.shape_cast %146 : vector<32xf32> to vector<32x1xf32>
    %148 = vector.broadcast %147 : vector<32x1xf32> to vector<32x32xf32>
    %149 = arith.subf %145, %148 : vector<32x32xf32>
    %150 = math.exp %149 : vector<32x32xf32>
    %cst_49 = arith.constant dense<0.000000e+00> : vector<32xf32>
    %151 = vector.multi_reduction <add>, %150, %cst_49 [1] : vector<32x32xf32> to vector<32xf32>
    %152 = vector.shape_cast %151 : vector<32xf32> to vector<32x1xf32>
    %cst_50 = arith.constant 1.000000e+00 : f32
    %153 = vector.broadcast %cst_50 : f32 to vector<32x1xf32>
    %154 = arith.divf %153, %152 : vector<32x1xf32>
    %155 = vector.broadcast %154 : vector<32x1xf32> to vector<32x32xf32>
    %156 = arith.mulf %150, %155 : vector<32x32xf32>
    %cst_51 = arith.constant dense<0.000000e+00> : vector<32x16xf32>
    %157 = tpu.matmul %156, %143, %cst_51 {dimension_numbers = #tpu.dot_dimension_numbers<[1], [0], [0], [1], [0, 0, 1, 1], [], []>} : vector<32x32xf32>, vector<32x16xf32>, vector<32x16xf32> -> vector<32x16xf32>
    %158 = vector.extract_strided_slice %157 {offsets = [0, 0], sizes = [16, 16], strides = [1, 1]} : vector<32x16xf32> to vector<16x16xf32>
    %159 = vector.extract_strided_slice %157 {offsets = [16, 0], sizes = [16, 16], strides = [1, 1]} : vector<32x16xf32> to vector<16x16xf32>
    %160 = tpu.concatenate %158, %159 in 1 : vector<16x16xf32>, vector<16x16xf32> -> vector<16x32xf32>
    %cst_52 = arith.constant 0.000000e+00 : f32
    %161 = vector.broadcast %cst_52 : f32 to vector<16x32xf32>
    %162 = arith.maximumf %160, %161 : vector<16x32xf32>
    %163 = arith.addf %162, %128 : vector<16x32xf32>
    %c8 = arith.constant 8 : index
    %c0_53 = arith.constant 0 : index
    %164 = vector.load %arg4[%c8, %c0_53] : memref<16x128xf32, #tpu.memory_space<vmem>>, vector<1x32xf32>
    %c10 = arith.constant 10 : index
    %c0_54 = arith.constant 0 : index
    %165 = vector.load %arg4[%c10, %c0_54] : memref<16x128xf32, #tpu.memory_space<vmem>>, vector<1x32xf32>
    %cst_55 = arith.constant dense<0.000000e+00> : vector<16xf32>
    %166 = vector.multi_reduction <add>, %163, %cst_55 [1] : vector<16x32xf32> to vector<16xf32>
    %167 = vector.shape_cast %166 : vector<16xf32> to vector<16x1xf32>
    %cst_56 = arith.constant 3.200000e+01 : f32
    %168 = vector.broadcast %cst_56 : f32 to vector<16x1xf32>
    %169 = arith.divf %167, %168 : vector<16x1xf32>
    %170 = vector.broadcast %169 : vector<16x1xf32> to vector<16x32xf32>
    %171 = arith.subf %163, %170 : vector<16x32xf32>
    %172 = arith.mulf %171, %171 : vector<16x32xf32>
    %cst_57 = arith.constant dense<0.000000e+00> : vector<16xf32>
    %173 = vector.multi_reduction <add>, %172, %cst_57 [1] : vector<16x32xf32> to vector<16xf32>
    %174 = vector.shape_cast %173 : vector<16xf32> to vector<16x1xf32>
    %cst_58 = arith.constant 3.200000e+01 : f32
    %175 = vector.broadcast %cst_58 : f32 to vector<16x1xf32>
    %176 = arith.divf %174, %175 : vector<16x1xf32>
    %177 = vector.broadcast %169 : vector<16x1xf32> to vector<16x32xf32>
    %178 = arith.subf %163, %177 : vector<16x32xf32>
    %cst_59 = arith.constant 9.99999974E-6 : f32
    %179 = vector.broadcast %cst_59 : f32 to vector<16x1xf32>
    %180 = arith.addf %176, %179 : vector<16x1xf32>
    %181 = math.rsqrt %180 : vector<16x1xf32>
    %182 = vector.broadcast %181 : vector<16x1xf32> to vector<16x32xf32>
    %183 = arith.mulf %178, %182 : vector<16x32xf32>
    %184 = vector.broadcast %164 : vector<1x32xf32> to vector<16x32xf32>
    %185 = arith.mulf %184, %183 : vector<16x32xf32>
    %186 = vector.broadcast %165 : vector<1x32xf32> to vector<16x32xf32>
    %187 = arith.addf %185, %186 : vector<16x32xf32>
    %c1_60 = arith.constant 1 : index
    %c0_61 = arith.constant 0 : index
    %c0_62 = arith.constant 0 : index
    %188 = vector.load %arg3[%c1_60, %c0_61, %c0_62] : memref<2x32x96xf32, #tpu.memory_space<vmem>>, vector<1x32x96xf32>
    %189 = vector.shape_cast %188 : vector<1x32x96xf32> to vector<32x96xf32>
    %cst_63 = arith.constant dense<0.000000e+00> : vector<16x96xf32>
    %190 = tpu.matmul %187, %189, %cst_63 {dimension_numbers = #tpu.dot_dimension_numbers<[1], [0], [0], [1], [0, 0, 1, 1], [], []>} : vector<16x32xf32>, vector<32x96xf32>, vector<16x96xf32> -> vector<16x96xf32>
    %c7 = arith.constant 7 : index
    %c0_64 = arith.constant 0 : index
    %191 = vector.load %arg4[%c7, %c0_64] : memref<16x128xf32, #tpu.memory_space<vmem>>, vector<1x96xf32>
    %192 = vector.broadcast %191 : vector<1x96xf32> to vector<16x96xf32>
    %193 = arith.addf %190, %192 : vector<16x96xf32>
    %194 = vector.extract_strided_slice %193 {offsets = [0, 0], sizes = [16, 16], strides = [1, 1]} : vector<16x96xf32> to vector<16x16xf32>
    %195 = vector.extract_strided_slice %193 {offsets = [0, 16], sizes = [16, 16], strides = [1, 1]} : vector<16x96xf32> to vector<16x16xf32>
    %196 = tpu.concatenate %194, %195 in 0 : vector<16x16xf32>, vector<16x16xf32> -> vector<32x16xf32>
    %197 = vector.extract_strided_slice %193 {offsets = [0, 32], sizes = [16, 16], strides = [1, 1]} : vector<16x96xf32> to vector<16x16xf32>
    %198 = vector.extract_strided_slice %193 {offsets = [0, 48], sizes = [16, 16], strides = [1, 1]} : vector<16x96xf32> to vector<16x16xf32>
    %199 = tpu.concatenate %197, %198 in 0 : vector<16x16xf32>, vector<16x16xf32> -> vector<32x16xf32>
    %200 = vector.extract_strided_slice %193 {offsets = [0, 64], sizes = [16, 16], strides = [1, 1]} : vector<16x96xf32> to vector<16x16xf32>
    %201 = vector.extract_strided_slice %193 {offsets = [0, 80], sizes = [16, 16], strides = [1, 1]} : vector<16x96xf32> to vector<16x16xf32>
    %202 = tpu.concatenate %200, %201 in 0 : vector<16x16xf32>, vector<16x16xf32> -> vector<32x16xf32>
    %cst_65 = arith.constant dense<0.000000e+00> : vector<32x32xf32>
    %203 = tpu.matmul %196, %199, %cst_65 {dimension_numbers = #tpu.dot_dimension_numbers<[1], [1], [0], [0], [0, 0, 1, 0], [], []>} : vector<32x16xf32>, vector<32x16xf32>, vector<32x32xf32> -> vector<32x32xf32>
    %204 = arith.addf %203, %64 : vector<32x32xf32>
    %cst_66 = arith.constant dense<0xFF800000> : vector<32xf32>
    %205 = vector.multi_reduction <maximumf>, %204, %cst_66 [1] : vector<32x32xf32> to vector<32xf32>
    %206 = vector.shape_cast %205 : vector<32xf32> to vector<32x1xf32>
    %207 = vector.broadcast %206 : vector<32x1xf32> to vector<32x32xf32>
    %208 = arith.subf %204, %207 : vector<32x32xf32>
    %209 = math.exp %208 : vector<32x32xf32>
    %cst_67 = arith.constant dense<0.000000e+00> : vector<32xf32>
    %210 = vector.multi_reduction <add>, %209, %cst_67 [1] : vector<32x32xf32> to vector<32xf32>
    %211 = vector.shape_cast %210 : vector<32xf32> to vector<32x1xf32>
    %cst_68 = arith.constant 1.000000e+00 : f32
    %212 = vector.broadcast %cst_68 : f32 to vector<32x1xf32>
    %213 = arith.divf %212, %211 : vector<32x1xf32>
    %214 = vector.broadcast %213 : vector<32x1xf32> to vector<32x32xf32>
    %215 = arith.mulf %209, %214 : vector<32x32xf32>
    %cst_69 = arith.constant dense<0.000000e+00> : vector<32x16xf32>
    %216 = tpu.matmul %215, %202, %cst_69 {dimension_numbers = #tpu.dot_dimension_numbers<[1], [0], [0], [1], [0, 0, 1, 1], [], []>} : vector<32x32xf32>, vector<32x16xf32>, vector<32x16xf32> -> vector<32x16xf32>
    %217 = vector.extract_strided_slice %216 {offsets = [0, 0], sizes = [16, 16], strides = [1, 1]} : vector<32x16xf32> to vector<16x16xf32>
    %218 = vector.extract_strided_slice %216 {offsets = [16, 0], sizes = [16, 16], strides = [1, 1]} : vector<32x16xf32> to vector<16x16xf32>
    %219 = tpu.concatenate %217, %218 in 1 : vector<16x16xf32>, vector<16x16xf32> -> vector<16x32xf32>
    %cst_70 = arith.constant 0.000000e+00 : f32
    %220 = vector.broadcast %cst_70 : f32 to vector<16x32xf32>
    %221 = arith.maximumf %219, %220 : vector<16x32xf32>
    %222 = arith.addf %221, %187 : vector<16x32xf32>
    %c9 = arith.constant 9 : index
    %c0_71 = arith.constant 0 : index
    %223 = vector.load %arg4[%c9, %c0_71] : memref<16x128xf32, #tpu.memory_space<vmem>>, vector<1x32xf32>
    %c11 = arith.constant 11 : index
    %c0_72 = arith.constant 0 : index
    %224 = vector.load %arg4[%c11, %c0_72] : memref<16x128xf32, #tpu.memory_space<vmem>>, vector<1x32xf32>
    %cst_73 = arith.constant dense<0.000000e+00> : vector<16xf32>
    %225 = vector.multi_reduction <add>, %222, %cst_73 [1] : vector<16x32xf32> to vector<16xf32>
    %226 = vector.shape_cast %225 : vector<16xf32> to vector<16x1xf32>
    %cst_74 = arith.constant 3.200000e+01 : f32
    %227 = vector.broadcast %cst_74 : f32 to vector<16x1xf32>
    %228 = arith.divf %226, %227 : vector<16x1xf32>
    %229 = vector.broadcast %228 : vector<16x1xf32> to vector<16x32xf32>
    %230 = arith.subf %222, %229 : vector<16x32xf32>
    %231 = arith.mulf %230, %230 : vector<16x32xf32>
    %cst_75 = arith.constant dense<0.000000e+00> : vector<16xf32>
    %232 = vector.multi_reduction <add>, %231, %cst_75 [1] : vector<16x32xf32> to vector<16xf32>
    %233 = vector.shape_cast %232 : vector<16xf32> to vector<16x1xf32>
    %cst_76 = arith.constant 3.200000e+01 : f32
    %234 = vector.broadcast %cst_76 : f32 to vector<16x1xf32>
    %235 = arith.divf %233, %234 : vector<16x1xf32>
    %236 = vector.broadcast %228 : vector<16x1xf32> to vector<16x32xf32>
    %237 = arith.subf %222, %236 : vector<16x32xf32>
    %cst_77 = arith.constant 9.99999974E-6 : f32
    %238 = vector.broadcast %cst_77 : f32 to vector<16x1xf32>
    %239 = arith.addf %235, %238 : vector<16x1xf32>
    %240 = math.rsqrt %239 : vector<16x1xf32>
    %241 = vector.broadcast %240 : vector<16x1xf32> to vector<16x32xf32>
    %242 = arith.mulf %237, %241 : vector<16x32xf32>
    %243 = vector.broadcast %223 : vector<1x32xf32> to vector<16x32xf32>
    %244 = arith.mulf %243, %242 : vector<16x32xf32>
    %245 = vector.broadcast %224 : vector<1x32xf32> to vector<16x32xf32>
    %246 = arith.addf %244, %245 : vector<16x32xf32>
    %247 = vector.extract_strided_slice %246 {offsets = [0, 0], sizes = [8, 32], strides = [1, 1]} : vector<16x32xf32> to vector<8x32xf32>
    %cst_78 = arith.constant dense<0xFF800000> : vector<32xf32>
    %248 = vector.multi_reduction <maximumf>, %247, %cst_78 [0] : vector<8x32xf32> to vector<32xf32>
    %249 = vector.shape_cast %248 : vector<32xf32> to vector<1x32xf32>
    %250 = vector.extract_strided_slice %246 {offsets = [8, 0], sizes = [8, 32], strides = [1, 1]} : vector<16x32xf32> to vector<8x32xf32>
    %cst_79 = arith.constant dense<0xFF800000> : vector<32xf32>
    %251 = vector.multi_reduction <maximumf>, %250, %cst_79 [0] : vector<8x32xf32> to vector<32xf32>
    %252 = vector.shape_cast %251 : vector<32xf32> to vector<1x32xf32>
    %253 = tpu.concatenate %246, %249, %252 in 0 : vector<16x32xf32>, vector<1x32xf32>, vector<1x32xf32> -> vector<18x32xf32>
    %c0_80 = arith.constant 0 : index
    %c0_81 = arith.constant 0 : index
    %254 = vector.load %arg5[%c0_80, %c0_81] : memref<18x32xf32, #tpu.memory_space<vmem>>, vector<18x32xf32>
    tpu.vector_store %arg5[%c0_80, %c0_81], %253 {strides = array<i32>} : memref<18x32xf32, #tpu.memory_space<vmem>>, vector<18x32xf32>,
    return
  }
}

</mosaic_0001>

<bundles_post_ra>
// kernel: tpu_custom_call.1
= control target key start
LH: loop header
LB: loop body
LE: loop exit
PB: predicated region body
PF: predicated region fallthrough
CT: control target
= control target key end

     0   :  { %10 = vsyncpa [#allocation5], 0  ;;  %s2154_s0 = inlined_call_operand.hbm [shape: s32[2], index: 0, kind: input, shape index: {}]   ;;  %s2155_s1 = inlined_call_operand.hbm [shape: f32[16,32], index: 1, kind: input, shape index: {}]   ;;  %s2156_s2 = inlined_call_operand.hbm [shape: f32[2,32,32], index: 2, kind: input, shape index: {}]   ;;  %s2157_s3 = inlined_call_operand.hbm [shape: f32[2,32,96], index: 3, kind: input, shape index: {}]   ;;  %s2158_s4 = inlined_call_operand.hbm [shape: f32[16,128], index: 4, kind: input, shape index: {}]   ;;  %s2159_s5 = inlined_call_operand.hbm [shape: f32[18,32], index: 5, kind: output, shape index: {}]  }
   0x1   :  { %11 = vsyncpa [#allocation3], 0 }
   0x2   :  { %12 = vsyncpa [#allocation8], 0 }
   0x3   :  { %13 = vsyncpa [#allocation11], 0 }
   0x4   :  { %14 = vsyncpa [#allocation4], 0  ;;  %s1864_s18 = smov [#allocation7]   ;;  %s1865_s20 = smov [#allocation6]  }
   0x5   :  { %s40_s19 = sshll.u32 %s1864_s18, 4  ;;  %s28_s21 = sshll.u32 %s1865_s20, 4  ;;  %s41_s19 = int_to_ptr.vmem [resolvable:$true] %s40_s19  ;;  %s29_s21 = int_to_ptr.vmem [resolvable:$true] %s28_s21 }
   0x6   :  { %s1734_s24 = scalar_lea.hbm %s2156_s2, 1024 }
   0x7   :  { %p1735_p0 = scmp.ne.s32.totalorder %s2156_s2, %s1734_s24  ;;  %p1738_p1 = scmp.lt.u32.totalorder %s1734_s24, %s2156_s2 }
   0x9   :  { %p1740_p2 = pnand %p1738_p1, %p1735_p0 }
   0xb   :  { %1743 = shalt.err (!%p1740_p2)
}
   0xc   :  { %s1744_s29 = scalar_lea.vmem %s41_s19, 1024  ;;  %p1749_p4 = scmp.lt.s32.totalorder %s41_s19, %s41_s19 }
   0xd   :  { %p1745_p3 = scmp.ne.s32.totalorder %s41_s19, %s1744_s29  ;;  %p1750_p5 = scmp.lt.s32.totalorder %s1744_s29, %s1744_s29 }
   0xf   :  { %p1751_p6 = por %p1750_p5, %p1749_p4 }
  0x11   :  { %p1752_p7 = pnand %p1751_p6, %p1745_p3 }
  0x13   :  { %1755 = shalt.err (!%p1752_p7)
}
  0x14   :  { %s1866_s30 = smov 128   ;;  %s1867_s6 = smov 8  }
  0x15   :  { %46 = dma.hbm_to_vmem [thread:$0]  %s2156_s2, 1024, %s41_s19, [#allocation8], %s1866_s30, %s1866_s30, %s1867_s6  }
  0x16   :  { %s1756_s11 = scalar_lea.hbm %s2154_s0, 16 }
  0x17   :  { %p1757_p8 = scmp.ne.s32.totalorder %s2154_s0, %s1756_s11  ;;  %p1760_p9 = scmp.lt.u32.totalorder %s1756_s11, %s2154_s0 }
  0x19   :  { %p1762_p10 = pnand %p1760_p9, %p1757_p8 }
  0x1b   :  { %1765 = shalt.err (!%p1762_p10)
}
  0x1c   :  { %s1868_s16 = smov [#allocation2]   ;;  %s1766_s20 = scalar_lea.hbm %s2155_s1, 256 }
  0x1d   :  { %22 = dma.hbm_to_smem %s2154_s0, 16, %s1868_s16, [#allocation5]  }
  0x1e   :  { %p1767_p11 = scmp.ne.s32.totalorder %s2155_s1, %s1766_s20  ;;  %p1770_p12 = scmp.lt.u32.totalorder %s1766_s20, %s2155_s1 }
  0x20   :  { %p1772_p13 = pnand %p1770_p12, %p1767_p11 }
  0x22   :  { %1775 = shalt.err (!%p1772_p13)
}
  0x23   :  { %s1776_s26 = scalar_lea.vmem %s29_s21, 256  ;;  %p1781_p1 = scmp.lt.s32.totalorder %s29_s21, %s29_s21 }
  0x24   :  { %p1777_p0 = scmp.ne.s32.totalorder %s29_s21, %s1776_s26  ;;  %p1782_p2 = scmp.lt.s32.totalorder %s1776_s26, %s1776_s26 }
  0x26   :  { %p1783_p3 = por %p1782_p2, %p1781_p1 }
  0x28   :  { %p1784_p4 = pnand %p1783_p3, %p1777_p0 }
  0x2a   :  { %1787 = shalt.err (!%p1784_p4)
}
  0x2b   :  { %34 = dma.hbm_to_vmem [thread:$0]  %s2155_s1, 256, %s29_s21, [#allocation3], %s1866_s30, %s1866_s30, %s1867_s6  }
  0x2c   :  { %s1869_s28 = smov [#allocation9]   ;;  %s1870_s7 = smov [#allocation10]  }
  0x2d   :  { %s52_s29 = sshll.u32 %s1869_s28, 4  ;;  %s64_s8 = sshll.u32 %s1870_s7, 4  ;;  %s53_s29 = int_to_ptr.vmem [resolvable:$true] %s52_s29  ;;  %s65_s8 = int_to_ptr.vmem [resolvable:$true] %s64_s8 }
  0x2e   :  { %s1788_s11 = scalar_lea.hbm %s2157_s3, 1024 }
  0x2f   :  { %p1789_p5 = scmp.ne.s32.totalorder %s2157_s3, %s1788_s11  ;;  %p1792_p6 = scmp.lt.u32.totalorder %s1788_s11, %s2157_s3 }
  0x31   :  { %p1794_p7 = pnand %p1792_p6, %p1789_p5 }
  0x33   :  { %1797 = shalt.err (!%p1794_p7)
}
  0x34   :  { %s1798_s1 = scalar_lea.vmem %s53_s29, 1024  ;;  %p1803_p9 = scmp.lt.s32.totalorder %s53_s29, %s53_s29 }
  0x35   :  { %p1799_p8 = scmp.ne.s32.totalorder %s53_s29, %s1798_s1  ;;  %p1804_p10 = scmp.lt.s32.totalorder %s1798_s1, %s1798_s1 }
  0x37   :  { %p1805_p11 = por %p1804_p10, %p1803_p9 }
  0x39   :  { %p1806_p12 = pnand %p1805_p11, %p1799_p8 }
  0x3b   :  { %1809 = shalt.err (!%p1806_p12)
}
  0x3c   :  { %58 = dma.hbm_to_vmem [thread:$0]  %s2157_s3, 1024, %s53_s29, [#allocation8], %s1866_s30, %s1866_s30, %s1867_s6  }
  0x3d   :  { %s1810_s2 = scalar_lea.hbm %s2158_s4, 256 }
  0x3e   :  { %p1811_p13 = scmp.ne.s32.totalorder %s2158_s4, %s1810_s2  ;;  %p1814_p0 = scmp.lt.u32.totalorder %s1810_s2, %s2158_s4 }
  0x40   :  { %p1816_p1 = pnand %p1814_p0, %p1811_p13 }
  0x42   :  { %1819 = shalt.err (!%p1816_p1)
}
  0x43   :  { %s1820_s24 = scalar_lea.vmem %s65_s8, 256  ;;  %p1825_p3 = scmp.lt.s32.totalorder %s65_s8, %s65_s8 }
  0x44   :  { %p1821_p2 = scmp.ne.s32.totalorder %s65_s8, %s1820_s24  ;;  %p1826_p4 = scmp.lt.s32.totalorder %s1820_s24, %s1820_s24 }
  0x46   :  { %p1827_p5 = por %p1826_p4, %p1825_p3 }
  0x48   :  { %p1828_p6 = pnand %p1827_p5, %p1821_p2 }
  0x4a   :  { %1831 = shalt.err (!%p1828_p6)
}
  0x4b   :  { %70 = dma.hbm_to_vmem [thread:$0]  %s2158_s4, 256, %s65_s8, [#allocation11], %s1866_s30, %s1866_s30, %s1867_s6  }
  0x4c   :  { %1854 = dma.done.wait [#allocation5], 16  }
  0x4d   :  { %1855 = vsyncadd [#allocation5], 4294967280 }
  0x4e   :  { %1856 = dma.done.wait [#allocation3], 256  }
  0x4f   :  { %1857 = vsyncadd [#allocation3], 4294967040 }
  0x50   :  { %1858 = dma.done.wait [#allocation8], 2048  }
  0x51   :  { %1859 = vsyncadd [#allocation8], 4294965248 }
  0x52   :  { %1860 = dma.done.wait [#allocation11], 256  }
  0x53   :  { %1861 = vsyncadd [#allocation11], 4294967040 }
  0x54   :  { %86 = sfence }
  0x55   :  { %v210_v0 = vld [vmem:[#allocation7] sm:$0xff]  ;;  %v211_v1 = vld [vmem:[#allocation7 + $0x8] sm:$0xff]  ;;  %v212_v2 = vld [vmem:[#allocation7 + $0x10] sm:$0xff]  ;;  %vm2161_vm0 = vcmask 261120   ;;  %vm2160_vm1 = vcmask 130048   ;;  %s1871_s4 = smov 112  }
  0x56   :  { %v1559_v3 = vpack.c.bf16 %v211_v1, %v210_v0  ;;  %v213_v4 = vld [vmem:[#allocation7 + $0x18] sm:$0xff]  ;;  %v87_v5 = vld [vmem:[#allocation6] sm:$0xff]  ;;  %v1359_v8 = vld [vmem:[#allocation10] ss:$0 sm:$0xff]  ;;  %s1872_s26 = smov 96   ;;  %s1358_s0 = sld [smem:[#allocation2 + $0x1]] }
  0x57   :  { %v1563_v6 = vpack.c.bf16 %v213_v4, %v212_v2  ;;  %1467 = vmatprep.mubr.msk.f32.mxu0 %vm2161_vm0, %v87_v5  ;;  %v88_v7 = vld [vmem:[#allocation6 + $0x8] sm:$0xff]  ;;  %v345_v25 = vld [vmem:[#allocation7 + $0x20] sm:$0xff]  ;;  %v346_v26 = vld [vmem:[#allocation7 + $0x28] sm:$0xff]  ;;  %s154_s27 = sld [smem:[#allocation2]]  ;;  %vm1874_vm9 = vmmov 1   ;;  %s1876_s28 = smov 64  }
  0x58   :  { %1560 = vmatprep.subr.bf16.mxu0 %v1559_v3  ;;  %v347_v27 = vld [vmem:[#allocation7 + $0x30] sm:$0xff]  ;;  %v1567_v28 = vpack.c.bf16 %v346_v26, %v345_v25  ;;  %v348_v29 = vld [vmem:[#allocation7 + $0x38] sm:$0xff]  ;;  %v1362_v38 = vld [vmem:[#allocation10 + $0x2] ss:$0 sm:$0xff]  ;;  %s1877_s29 = smov 16   ;;  %s1878_s7 = smov [#allocation12]  }
  0x59   :  { %1562 = vmatpush3.bf16.msra.mxu0 %v1559_v3  ;;  %v1571_v30 = vpack.c.bf16 %v348_v29, %v347_v27  ;;  %v1363_v40 = vld [vmem:[#allocation10 + $0x4] ss:$0 sm:$0xff]  ;;  %v1364_v49 = vld [vmem:[#allocation10 + $0x1] ss:$0 sm:$0xff]  ;;  %v478_v3 = vld [vmem:[#allocation9 + $0x8] sm:$0xff]  ;;  %s1336_s8 = sshll.u32 %s1878_s7, 4  ;;  %s1337_s8 = int_to_ptr.vmem [resolvable:$true] %s1336_s8 }
  0x5a   :  { %1564 = vmatprep.subr.bf16.mxu0 %v1563_v6  ;;  %1568 = vmatprep.subr.bf16.mxu1 %v1567_v28  ;;  %v477_v2 = vld [vmem:[#allocation9] sm:$0xff]  ;;  %v479_v5 = vld [vmem:[#allocation9 + $0x10] sm:$0xff]  ;;  %vm2018_vm2 = vmpackc.low %vm2160_vm1, %vm2160_vm1  ;;  %s1832_s9 = scalar_lea.vmem %s1337_s8, 384  ;;  %p1837_p8 = scmp.lt.s32.totalorder %s1337_s8, %s1337_s8 }
  0x5b   :  { %1570 = vmatpush3.bf16.msra.mxu1 %v1567_v28  ;;  %v1575_v4 = vpack.c.bf16 %v478_v3, %v477_v2  ;;  %v1369_v26 = vld [vmem:[#allocation10 + $0x6] ss:$0 sm:$0xff]  ;;  %p1833_p7 = scmp.ne.s32.totalorder %s1337_s8, %s1832_s9  ;;  %p1838_p9 = scmp.lt.s32.totalorder %s1832_s9, %s1832_s9 }
  0x5c   :  { %1572 = vmatprep.subr.bf16.mxu1 %v1571_v30 }
  0x5d   :  { %1566 = vmatpush3.bf16.msra.mxu0 %v1563_v6  ;;  %v480_v6 = vld [vmem:[#allocation9 + $0x18] sm:$0xff]  ;;  %p1839_p10 = por %p1838_p9, %p1837_p8 }
  0x5e   :  { %1576 = vmatprep.subr.bf16.mxu0 %v1575_v4 }
  0x5f   :  { %1574 = vmatpush3.bf16.msra.mxu1 %v1571_v30  ;;  %p1840_p11 = pnand %p1839_p10, %p1833_p7 }
  0x60   :  { %1468 = vmatmul.mubr.msk.f32.vlgmr.msra.gmra.mrb[0].mxu0 %vm2161_vm0, %v88_v7  ;;  %v1579_v7 = vpack.c.bf16 %v480_v6, %v479_v5 }
  0x61   :  { %1578 = vmatpush3.bf16.msra.mxu0 %v1575_v4 }
  0x62   :  { %1580 = vmatprep.subr.bf16.mxu0 %v1579_v7 }
  0x65   :  { %1582 = vmatpush3.bf16.msra.mxu0 %v1579_v7 }
 0x133   :  { %v1469_v9 = vpop.f32.mrb[0].mxu0 }
 0x134   :  { %v292_v10 = vpop.f32.mrb[1].mxu0  ;;  %v298_v12 = vadd.f32 %v1469_v9, %v1359_v8 }
 0x135   :  { %v293_v11 = vadd.f32 %v1359_v8, %v292_v10 }
 0x136   :  { %v306_v14 = vsel %vm2161_vm0, %v298_v12, 0.0 }
 0x137   :  { %v303_v13 = vsel %vm2161_vm0, %v293_v11, 0.0 }
 0x138   :  { %304 = vadd.xlane.f32.xlu0 %v303_v13 }
 0x13c   :  { %307 = vadd.xlane.f32.xlu0 %v306_v14 }
 0x1c5   :  { %v305_v15 = vpop.xlane.xlu0 %304 }
 0x1c6   :  { %v310_v16 = vmul.f32 0.03125, %v305_v15  ;;  %v1367_v15 = vld [vmem:[#allocation10 + $0x3] ss:$0 sm:$0xff] }
 0x1c8   :  { %v312_v17 = vsub.f32 %v293_v11, %v310_v16 }
 0x1c9   :  { %v308_v18 = vpop.xlane.xlu0 %307 }
 0x1ca   :  { %v311_v19 = vmul.f32 0.03125, %v308_v18  ;;  %v314_v20 = vmul.f32 %v312_v17, %v312_v17  ;;  %v1368_v18 = vld [vmem:[#allocation10 + $0x5] ss:$0 sm:$0xff] }
 0x1cc   :  { %v313_v21 = vsub.f32 %v298_v12, %v311_v19  ;;  %v316_v22 = vsel %vm2161_vm0, %v314_v20, 0.0 }
 0x1cd   :  { %317 = vadd.xlane.f32.xlu1 %v316_v22 }
 0x1ce   :  { %v315_v23 = vmul.f32 %v313_v21, %v313_v21 }
 0x1d0   :  { %v319_v24 = vsel %vm2161_vm0, %v315_v23, 0.0 }
 0x1d1   :  { %320 = vadd.xlane.f32.xlu1 %v319_v24 }
 0x25a   :  { %v318_v31 = vpop.xlane.xlu1 %317 }
 0x25b   :  { %v322_v32 = vmul.f32 0.03125, %v318_v31 }
 0x25d   :  { %v324_v33 = vadd.f32 1e-05, %v322_v32 }
 0x25e   :  { %v321_v34 = vpop.xlane.xlu1 %320 }
 0x25f   :  { %1686 = vrsqrt.f32 %v324_v33  ;;  %v323_v35 = vmul.f32 0.03125, %v321_v34 }
 0x261   :  { %v325_v36 = vadd.f32 1e-05, %v323_v35 }
 0x263   :  { %1688 = vrsqrt.f32 %v325_v36 }
 0x269   :  { %v1687_v37 = vpop.eup %1686 }
 0x26a   :  { %v328_v39 = vmul.f32 %v1687_v37, %v312_v17 }
 0x26c   :  { %v334_v41 = vmul.f32 %v1362_v38, %v328_v39 }
 0x26d   :  { %v1689_v42 = vpop.eup %1688 }
 0x26e   :  { %v329_v43 = vmul.f32 %v1689_v42, %v313_v21  ;;  %v340_v44 = vadd.f32 %v1363_v40, %v334_v41 }
 0x270   :  { %v335_v45 = vmul.f32 %v1362_v38, %v329_v43  ;;  %v342_v46 = vmax.f32 %v340_v44, 0.0  ;;  %v2165_v38 = vmov 0  ;;  %v89_v44 = vlaneseq }
 0x271   :  { %v2166_v38 = vsel %vm2018_vm2, 4294967295, %v2165_v38 }
 0x272   :  { %v341_v47 = vadd.f32 %v1363_v40, %v335_v45  ;;  %1478 = vmatprep.mubr.msk.f32.mxu1 %vm2161_vm0, %v342_v46  ;;  %v95_v45 = vand.u32 127, %v89_v44  ;;  %v1873_v46 = vmov 0  }
 0x274   :  { %v343_v48 = vmax.f32 %v341_v47, 0.0  ;;  %vm104_vm3 = vcmp.ge.s32.totalorder %v95_v45, 8  ;;  %vm118_vm4 = vcmp.ge.s32.totalorder %v95_v45, 16  ;;  %vm133_vm5 = vcmp.ge.s32.totalorder %v95_v45, 24 }
 0x275   :  { %v105_v47 = vsel %vm104_vm3, 1, %v1873_v46 }
 0x276   :  { %1479 = vmatmul.mubr.msk.f32.vlgmr.msra.gmra.mrb[0].mxu1 %vm2161_vm0, %v343_v48  ;;  %v119_v48 = vsel %vm118_vm4, 1, %v1873_v46 }
 0x349   :  { %v1480_v50 = vpop.f32.mrb[0].mxu1 }
 0x34a   :  { %v432_v51 = vadd.f32 %v1480_v50, %v1364_v49  ;;  %v426_v52 = vpop.f32.mrb[1].mxu1  ;;  %v90_v50 = vshrl.u32 %v89_v44, 7 }
 0x34b   :  { %v427_v53 = vadd.f32 %v1364_v49, %v426_v52  ;;  %v120_v49 = vadd.s32 %v119_v48, %v105_v47 }
 0x34c   :  { %v440_v54 = vsel %vm2161_vm0, %v432_v51, 0.0 }
 0x34d   :  { %441 = vadd.xlane.f32.xlu1 %v440_v54  ;;  %v437_v55 = vsel %vm2161_vm0, %v427_v53, 0.0 }
 0x34e   :  { %438 = vadd.xlane.f32.xlu0 %v437_v55 }
 0x3da   :  { %v442_v56 = vpop.xlane.xlu1 %441 }
 0x3db   :  { %v444_v57 = vmul.f32 0.03125, %v442_v56  ;;  %v439_v58 = vpop.xlane.xlu0 %438  ;;  %v165_v56 = vstv %s1358_s0 }
 0x3dc   :  { %v443_v59 = vmul.f32 0.03125, %v439_v58  ;;  %v155_v58 = vstv %s154_s27 }
 0x3dd   :  { %v446_v60 = vsub.f32 %v432_v51, %v444_v57  ;;  %v134_v51 = vsel %vm133_vm5, 1, %v1873_v46  ;;  %vm186_vm7 = vcmp.lt.s32.totalorder %v90_v50, %v155_v58 }
 0x3de   :  { %v445_v61 = vsub.f32 %v427_v53, %v443_v59  ;;  %v135_v52 = vadd.s32 %v134_v51, %v120_v49  ;;  %v91_v53 = vadd.s32 8, %v90_v50  ;;  %v92_v59 = vadd.s32 16, %v90_v50  ;;  %vm194_vm12 = vmxor %vm186_vm7, %vm1874_vm9 }
 0x3df   :  { %v448_v62 = vmul.f32 %v446_v60, %v446_v60 }
 0x3e0   :  { %v447_v63 = vmul.f32 %v445_v61, %v445_v61  ;;  %v148_v54 = vmul.u32 8, %v135_v52  ;;  %v1355_v55 = vadd.s32 4294967288, %v91_v53  ;;  %vm1352_vm13 = vcmp.eq.s32.totalorder %v135_v52, 1 }
 0x3e1   :  { %v452_v0 = vsel %vm2161_vm0, %v448_v62, 0.0  ;;  %vm1351_vm3 = vcmp.eq.s32.totalorder %v135_v52, 0  ;;  %vm1353_vm7 = vcmp.eq.s32.totalorder %v135_v52, 2 }
 0x3e2   :  { %453 = vadd.xlane.f32.xlu1 %v452_v0  ;;  %v449_v1 = vsel %vm2161_vm0, %v447_v63, 0.0  ;;  %v149_v57 = vsub.s32 %v95_v45, %v148_v54  ;;  %vm187_vm6 = vcmp.lt.s32.totalorder %v1355_v55, %v165_v56  ;;  %v1875_v63 = vmov -10000.0  }
 0x3e3   :  { %450 = vadd.xlane.f32.xlu0 %v449_v1  ;;  %vm195_vm10 = vmxor %vm187_vm6, %vm1874_vm9 }
 0x3e4   :  { %vm2164_vm8 = vcmp.lt.s32.totalorder %v149_v57, %v165_v56  ;;  %vm190_vm11 = vcmp.lt.s32.totalorder %v149_v57, %v155_v58 }
 0x3e5   :  { %vm199_vm14 = vmor %vm2164_vm8, %vm195_vm10  ;;  %vm1354_vm10 = vcmp.eq.s32.totalorder %v135_v52, 3 }
 0x3e6   :  { %vm198_vm4 = vmor %vm190_vm11, %vm194_vm12  ;;  %vm2167_vm12 = vcmp.lt.s32.totalorder %v149_v57, %v165_v56 }
 0x3e7   :  { %vm203_vm5 = vmand %vm1352_vm13, %vm199_vm14 }
 0x3e8   :  { %v2038_v0 = vsel %vm203_vm5, 0.0, %v1875_v63 }
 0x46f   :  { %v454_v8 = vpop.xlane.xlu1 %453 }
 0x470   :  { %v456_v9 = vmul.f32 0.03125, %v454_v8  ;;  %v451_v10 = vpop.xlane.xlu0 %450 }
 0x471   :  { %v455_v11 = vmul.f32 0.03125, %v451_v10 }
 0x472   :  { %v458_v12 = vadd.f32 1e-05, %v456_v9 }
 0x473   :  { %v457_v13 = vadd.f32 1e-05, %v455_v11 }
 0x474   :  { %1690 = vrsqrt.f32 %v458_v12 }
 0x475   :  { %1692 = vrsqrt.f32 %v457_v13 }
 0x47e   :  { %v1691_v14 = vpop.eup %1690 }
 0x47f   :  { %v1693_v16 = vpop.eup %1692  ;;  %v462_v17 = vmul.f32 %v1691_v14, %v446_v60  ;;  %v93_v60 = vadd.s32 24, %v90_v50 }
 0x480   :  { %v461_v19 = vmul.f32 %v1693_v16, %v445_v61  ;;  %v1356_v61 = vadd.s32 4294967280, %v92_v59 }
 0x481   :  { %v468_v20 = vmul.f32 %v1367_v15, %v462_v17  ;;  %v1357_v62 = vadd.s32 4294967272, %v93_v60 }
 0x482   :  { %v467_v21 = vmul.f32 %v1367_v15, %v461_v19  ;;  %vm188_vm15 = vcmp.lt.s32.totalorder %v1356_v61, %v155_v58 }
 0x483   :  { %v1993_v22 = vadd.f32 %v1368_v18, %v468_v20 }
 0x484   :  { %v1995_v23 = vadd.f32 %v1368_v18, %v467_v21 }
 0x485   :  { %v476_v25 = vmax.f32 %v1993_v22, 0.0  ;;  %v896_v22 = vld [vmem:[#allocation9 + $0x28] sm:$0xff] }
 0x486   :  { %v475_v24 = vmax.f32 %v1995_v23, 0.0 }
 0x488   :  { %1489 = vmatprep.mubr.msk.f32.mxu0 %vm2161_vm0, %v475_v24 }
 0x489   :  { %1490 = vmatmul.mubr.msk.f32.vlgmr.msra.gmra.mrb[2].mxu0 %vm2161_vm0, %v476_v25  ;;  %vm196_vm0 = vmxor %vm188_vm15, %vm1874_vm9 }
 0x48a   :  { %vm200_vm8 = vmor %vm190_vm11, %vm196_vm0 }
 0x48b   :  { %vm204_vm14 = vmand %vm1353_vm7, %vm200_vm8 }
 0x48c   :  { %v2046_v7 = vsel %vm204_vm14, 0.0, %v1875_v63 }
 0x55c   :  { %v1491_v27 = vpop.f32.mrb[2].mxu0 }
 0x55d   :  { %v564_v28 = vadd.f32 %v1491_v27, %v1369_v26  ;;  %v558_v29 = vpop.f32.mrb[3].mxu0 }
 0x55e   :  { %v559_v30 = vadd.f32 %v1369_v26, %v558_v29 }
 0x55f   :  { %571 = vrot.lane.b32.xlu1 %v564_v28, %s1871_s4 }
 0x560   :  { %569 = vrot.lane.b32.xlu0 %v559_v30, %s1871_s4  ;;  %1500 = vmatprep.mubr.msk.f32.mxu1 %vm2160_vm1, %v559_v30  ;;  %v2008_v31 = vpack.i.bf16 %v564_v28, %v559_v30 }
 0x563   :  { %1647 = vrot.lane.b32.xlu1 %v2008_v31, %s1872_s26 }
 0x5d1   :  { %v572_v32 = vpop.permute.xlu1 %571 }
 0x5d2   :  { %v570_v33 = vpop.permute.xlu0 %569 }
 0x5d3   :  { %v2012_v34 = vpack.i.bf16 %v572_v32, %v570_v33 }
 0x5d5   :  { %v1648_v35 = vpop.permute.xlu1 %1647  ;;  %1652 = vrot.lane.b32.xlu1 %v2012_v34, %s1872_s26 }
 0x5d6   :  { %v1650_v36 = vunpack.i.h.bf16 %v1648_v35  ;;  %v1649_v37 = vunpack.i.l.bf16 %v1648_v35 }
 0x5d8   :  { %v1583_v39 = vpack.c.bf16 %v1650_v36, %v1649_v37 }
 0x5da   :  { %1585 = vmatprep.subr.msk.bf16.mxu1 %vm2018_vm2, %v1583_v39 }
 0x5db   :  { %1588 = vmatpush3.bf16.xpose.msk.msra.mxu1 %vm2018_vm2, %v1583_v39 }
 0x647   :  { %v1653_v40 = vpop.permute.xlu1 %1652 }
 0x648   :  { %v1655_v41 = vunpack.i.h.bf16 %v1653_v40  ;;  %v1654_v42 = vunpack.i.l.bf16 %v1653_v40 }
 0x64a   :  { %v1589_v43 = vpack.c.bf16 %v1655_v41, %v1654_v42 }
 0x64c   :  { %1591 = vmatprep.subr.msk.bf16.mxu1 %vm2018_vm2, %v1589_v43 }
 0x64d   :  { %1594 = vmatpush3.bf16.xpose.msk.msra.mxu1 %vm2018_vm2, %v1589_v43  ;;  %vm202_vm2 = vmand %vm1351_vm3, %vm198_vm4  ;;  %vm2168_vm3 = vcmask 261120  }
 0x64e   :  { %v2040_v1 = vsel %vm202_vm2, 0.0, %v1875_v63  ;;  %vm2169_vm0 = vmmov %vm2168_vm3 }
 0x64f   :  { %vm2171_vm2 = vmmov %vm2169_vm0 }
 0x650   :  { %vm2172_vm8 = vmmov %vm2169_vm0 }
 0x651   :  { %vm2174_vm11 = vmmov %vm2169_vm0 }
 0x652   :  { %vm2175_vm4 = vmmov %vm2169_vm0 }
 0x653   :  { %vm2176_vm5 = vmmov %vm2169_vm0 }
 0x654   :  { %1501 = vmatmul.mubr.msk.f32.vlgmr.msra.gmra.mrb[2].mxu1 %vm2160_vm1, %v564_v28  ;;  %vm2178_vm7 = vmmov %vm2169_vm0 }
 0x655   :  { %1503 = vmatprep.mubr.msk.f32.mxu1 %vm2160_vm1, %v570_v33  ;;  %vm2182_vm14 = vmmov %vm2169_vm0 }
 0x658   :  { %1504 = vmatmul.mubr.msk.f32.gmra.mrb[4].mxu1 %vm2160_vm1, %v572_v32  ;;  %vm189_vm1 = vcmp.lt.s32.totalorder %v1357_v62, %v165_v56 }
 0x659   :  { %vm197_vm6 = vmxor %vm189_vm1, %vm1874_vm9 }
 0x65a   :  { %vm201_vm13 = vmor %vm2167_vm12, %vm197_vm6  ;;  %vm2180_vm12 = vcmask 130048  }
 0x65b   :  { %vm205_vm15 = vmand %vm1354_vm10, %vm201_vm13 }
 0x65c   :  { %v2049_v10 = vsel %vm205_vm15, 0.0, %v1875_v63  ;;  %vm2170_vm1 = vmmov %vm2169_vm0 }
 0x65d   :  { %vm2173_vm9 = vmmov %vm2169_vm0 }
 0x65e   :  { %vm2177_vm6 = vmmov %vm2169_vm0 }
 0x65f   :  { %vm2179_vm10 = vmmov %vm2169_vm0 }
 0x660   :  { %vm2181_vm13 = vmmov %vm2180_vm12 }
 0x661   :  { %vm2183_vm15 = vmmov %vm2169_vm0 }
 0x727   :  { %v1502_v2 = vpop.f32.mrb[2].mxu1 }
 0x728   :  { %v670_v3 = vadd.f32 %v1502_v2, %v2038_v0  ;;  %v664_v4 = vpop.f32.mrb[3].mxu1 }
 0x729   :  { %v665_v5 = vadd.f32 %v664_v4, %v2040_v1 }
 0x72a   :  { %v686_v6 = vsel %vm2168_vm3, %v670_v3, -inf  ;;  %vm2184_vm3 = vmmov %vm2169_vm0 }
 0x72b   :  { %687 = vmax.xlane.f32.xlu1 %v686_v6  ;;  %v1505_v8 = vpop.f32.mrb[4].mxu1  ;;  %v683_v9 = vsel %vm2169_vm0, %v665_v5, -inf }
 0x72c   :  { %v674_v11 = vpop.f32.mrb[5].mxu1  ;;  %684 = vmax.xlane.f32.xlu0 %v683_v9  ;;  %v680_v13 = vadd.f32 %v1505_v8, %v2049_v10 }
 0x72d   :  { %v675_v12 = vadd.f32 %v674_v11, %v2046_v7 }
 0x72e   :  { %v692_v15 = vsel %vm2171_vm2, %v680_v13, -inf  ;;  %vm2186_vm2 = vmmov %vm2169_vm0 }
 0x72f   :  { %v689_v14 = vsel %vm2170_vm1, %v675_v12, -inf  ;;  %vm2185_vm1 = vmmov %vm2169_vm0 }
 0x730   :  { %690 = vmax.xlane.f32.xlu0 %v689_v14 }
 0x734   :  { %693 = vmax.xlane.f32.xlu0 %v692_v15 }
 0x7b8   :  { %v688_v16 = vpop.xlane.xlu1 %687 }
 0x7b9   :  { %v696_v17 = vsub.f32 %v670_v3, %v688_v16  ;;  %v685_v18 = vpop.xlane.xlu0 %684 }
 0x7ba   :  { %v695_v19 = vsub.f32 %v665_v5, %v685_v18 }
 0x7bb   :  { %v701_v20 = vmul.f32 1.442695, %v696_v17 }
 0x7bc   :  { %v699_v21 = vmul.f32 1.442695, %v695_v19 }
 0x7bd   :  { %1694 = vpow2.f32 %v701_v20  ;;  %v691_v26 = vpop.xlane.xlu0 %690 }
 0x7be   :  { %1696 = vpow2.f32 %v699_v21  ;;  %v697_v27 = vsub.f32 %v675_v12, %v691_v26 }
 0x7c0   :  { %v703_v28 = vmul.f32 1.442695, %v697_v27  ;;  %v895_v27 = vld [vmem:[#allocation9 + $0x20] sm:$0xff] }
 0x7c1   :  { %v694_v29 = vpop.xlane.xlu0 %693 }
 0x7c2   :  { %1698 = vpow2.f32 %v703_v28  ;;  %v698_v30 = vsub.f32 %v680_v13, %v694_v29  ;;  %v897_v28 = vld [vmem:[#allocation9 + $0x30] sm:$0xff]  ;;  %v898_v29 = vld [vmem:[#allocation9 + $0x38] sm:$0xff] }
 0x7c4   :  { %v705_v32 = vmul.f32 1.442695, %v698_v30  ;;  %v1607_v30 = vpack.c.bf16 %v898_v29, %v897_v28 }
 0x7c6   :  { %1700 = vpow2.f32 %v705_v32 }
 0x7c7   :  { %v1695_v33 = vpop.eup %1694 }
 0x7c8   :  { %v1697_v35 = vpop.eup %1696  ;;  %v710_v36 = vsel %vm2172_vm8, %v1695_v33, 0.0  ;;  %vm2187_vm8 = vmmov %vm2180_vm12 }
 0x7c9   :  { %711 = vadd.xlane.f32.xlu1 %v710_v36  ;;  %v707_v37 = vsel %vm2173_vm9, %v1697_v35, 0.0  ;;  %vm2188_vm9 = vnez %v2166_v38 }
 0x7ca   :  { %708 = vadd.xlane.f32.xlu0 %v707_v37 }
 0x7cc   :  { %v1699_v39 = vpop.eup %1698 }
 0x7cd   :  { %v713_v40 = vsel %vm2174_vm11, %v1699_v39, 0.0  ;;  %vm2189_vm11 = vmmov %vm2187_vm8 }
 0x7ce   :  { %714 = vadd.xlane.f32.xlu0 %v713_v40 }
 0x7d0   :  { %v1701_v41 = vpop.eup %1700 }
 0x7d1   :  { %v716_v42 = vsel %vm2175_vm4, %v1701_v41, 0.0  ;;  %vm2190_vm4 = vmmov %vm2187_vm8 }
 0x7d2   :  { %717 = vadd.xlane.f32.xlu1 %v716_v42 }
 0x7e3   :  { %1662 = vrot.lane.b32.xlu1 %v2012_v34, %s1876_s28 }
 0x7e4   :  { %1657 = vrot.lane.b32.xlu0 %v2008_v31, %s1876_s28 }
 0x856   :  { %v712_v44 = vpop.xlane.xlu1 %711 }
 0x857   :  { %v709_v43 = vpop.xlane.xlu0 %708 }
 0x858   :  { %1702 = vrcp.f32 %v709_v43  ;;  %v1385_v43 = vld [vmem:[#allocation10 + $0xa] ss:$0 sm:$0xff] }
 0x859   :  { %1704 = vrcp.f32 %v712_v44 }
 0x85b   :  { %v715_v45 = vpop.xlane.xlu0 %714 }
 0x85c   :  { %1706 = vrcp.f32 %v715_v45 }
 0x85f   :  { %v718_v46 = vpop.xlane.xlu1 %717  ;;  %v1658_v47 = vpop.permute.xlu0 %1657 }
 0x860   :  { %v1660_v48 = vunpack.i.h.bf16 %v1658_v47  ;;  %v1659_v49 = vunpack.i.l.bf16 %v1658_v47  ;;  %1708 = vrcp.f32 %v718_v46 }
 0x862   :  { %v1703_v50 = vpop.eup %1702  ;;  %v1595_v51 = vpack.c.bf16 %v1660_v48, %v1659_v49 }
 0x863   :  { %v1663_v52 = vpop.permute.xlu1 %1662  ;;  %v727_v53 = vmul.f32 %v1703_v50, %v1697_v35  ;;  %v1705_v55 = vpop.eup %1704  ;;  %v1386_v50 = vld [vmem:[#allocation10 + $0x7] ss:$0 sm:$0xff] }
 0x864   :  { %v1665_v54 = vunpack.i.h.bf16 %v1663_v52  ;;  %v1664_v34 = vunpack.i.l.bf16 %v1663_v52  ;;  %1596 = vmatprep.subr.bf16.mxu0 %v1595_v51  ;;  %v728_v57 = vmul.f32 %v1705_v55, %v1695_v33 }
 0x865   :  { %1598 = vmatpush3.bf16.msra.mxu0 %v1595_v51  ;;  %1514 = vmatprep.mubr.msk.f32.mxu0 %vm2176_vm5, %v727_v53  ;;  %vm2191_vm5 = vmmov %vm2190_vm4 }
 0x866   :  { %v1599_v31 = vpack.c.bf16 %v1665_v54, %v1664_v34  ;;  %v1707_v56 = vpop.eup %1706 }
 0x867   :  { %v729_v59 = vmul.f32 %v1707_v56, %v1699_v39 }
 0x868   :  { %1600 = vmatprep.subr.bf16.mxu0 %v1599_v31 }
 0x869   :  { %1602 = vmatpush3.bf16.msra.mxu0 %v1599_v31 }
 0x86a   :  { %v1709_v58 = vpop.eup %1708 }
 0x86b   :  { %v730_v60 = vmul.f32 %v1709_v58, %v1701_v41  ;;  %v1384_v41 = vld [vmem:[#allocation10 + $0x8] ss:$0 sm:$0xff] }
 0x86c   :  { %1515 = vmatmul.mubr.msk.f32.vlgmr.msra.gmra.mrb[4].mxu0 %vm2177_vm6, %v728_v57  ;;  %vm2192_vm6 = vmmov %vm2169_vm0 }
 0x86d   :  { %1517 = vmatprep.mubr.msk.f32.mxu0 %vm2178_vm7, %v729_v59  ;;  %vm2193_vm7 = vmmov %vm2169_vm0 }
 0x870   :  { %1518 = vmatmul.mubr.msk.f32.gmra.mrb[6].mxu0 %vm2179_vm10, %v730_v60  ;;  %vm2194_vm10 = vmmov %vm2169_vm0 }
 0x93f   :  { %v1516_v61 = vpop.f32.mrb[4].mxu0 }
 0x940   :  { %v821_v62 = vpop.f32.mrb[5].mxu0 }
 0x943   :  { %v1519_v63 = vpop.f32.mrb[6].mxu0 }
 0x944   :  { %v831_v2 = vpop.f32.mrb[7].mxu0 }
 0x945   :  { %842 = vrot.lane.b32.xlu1 %v831_v2, %s1877_s29 }
 0x949   :  { %844 = vrot.lane.b32.xlu1 %v1519_v63, %s1877_s29 }
 0x9b7   :  { %v843_v3 = vpop.permute.xlu1 %842 }
 0x9b8   :  { %v848_v4 = vsel %vm2180_vm12, %v821_v62, %v843_v3  ;;  %vm2195_vm12 = vmmov %vm2169_vm0 }
 0x9b9   :  { %v850_v5 = vmax.f32 %v848_v4, 0.0 }
 0x9bb   :  { %v845_v6 = vpop.permute.xlu1 %844  ;;  %v852_v8 = vadd.f32 %v850_v5, %v475_v24 }
 0x9bc   :  { %v849_v9 = vsel %vm2181_vm13, %v1516_v61, %v845_v6  ;;  %vm2196_vm13 = vmmov %vm2169_vm0 }
 0x9bd   :  { %v851_v11 = vmax.f32 %v849_v9, 0.0  ;;  %v856_v12 = vsel %vm2182_vm14, %v852_v8, 0.0  ;;  %vm2197_vm14 = vmmov %vm2169_vm0 }
 0x9be   :  { %857 = vadd.xlane.f32.xlu0 %v856_v12 }
 0x9bf   :  { %v853_v13 = vadd.f32 %v851_v11, %v476_v25  ;;  %v1603_v25 = vpack.c.bf16 %v896_v22, %v895_v27 }
 0x9c1   :  { %v859_v14 = vsel %vm2183_vm15, %v853_v13, 0.0  ;;  %1604 = vmatprep.subr.bf16.mxu0 %v1603_v25  ;;  %vm2198_vm15 = vmmov %vm2169_vm0 }
 0x9c2   :  { %860 = vadd.xlane.f32.xlu1 %v859_v14  ;;  %1606 = vmatpush3.bf16.msra.mxu0 %v1603_v25 }
 0x9c3   :  { %1608 = vmatprep.subr.bf16.mxu0 %v1607_v30 }
 0x9c6   :  { %1610 = vmatpush3.bf16.msra.mxu0 %v1607_v30 }
 0xa4b   :  { %v858_v15 = vpop.xlane.xlu0 %857 }
 0xa4c   :  { %v862_v16 = vmul.f32 0.03125, %v858_v15 }
 0xa4e   :  { %v864_v17 = vsub.f32 %v852_v8, %v862_v16 }
 0xa4f   :  { %v861_v18 = vpop.xlane.xlu1 %860 }
 0xa50   :  { %v863_v19 = vmul.f32 0.03125, %v861_v18  ;;  %v866_v20 = vmul.f32 %v864_v17, %v864_v17 }
 0xa52   :  { %v865_v23 = vsub.f32 %v853_v13, %v863_v19  ;;  %v868_v24 = vsel %vm2184_vm3, %v866_v20, 0.0  ;;  %vm2199_vm3 = vmmov %vm2169_vm0 }
 0xa53   :  { %869 = vadd.xlane.f32.xlu0 %v868_v24 }
 0xa54   :  { %v867_v21 = vmul.f32 %v865_v23, %v865_v23 }
 0xa56   :  { %v871_v26 = vsel %vm2169_vm0, %v867_v21, 0.0 }
 0xa57   :  { %872 = vadd.xlane.f32.xlu0 %v871_v26 }
 0xae0   :  { %v870_v32 = vpop.xlane.xlu0 %869 }
 0xae1   :  { %v874_v33 = vmul.f32 0.03125, %v870_v32 }
 0xae3   :  { %v876_v35 = vadd.f32 1e-05, %v874_v33 }
 0xae4   :  { %v873_v36 = vpop.xlane.xlu0 %872 }
 0xae5   :  { %1710 = vrsqrt.f32 %v876_v35  ;;  %v875_v37 = vmul.f32 0.03125, %v873_v36 }
 0xae7   :  { %v877_v39 = vadd.f32 1e-05, %v875_v37 }
 0xae9   :  { %1712 = vrsqrt.f32 %v877_v39 }
 0xaef   :  { %v1711_v40 = vpop.eup %1710 }
 0xaf0   :  { %v880_v42 = vmul.f32 %v1711_v40, %v864_v17 }
 0xaf2   :  { %v886_v44 = vmul.f32 %v1384_v41, %v880_v42 }
 0xaf3   :  { %v1713_v45 = vpop.eup %1712 }
 0xaf4   :  { %v881_v46 = vmul.f32 %v1713_v45, %v865_v23  ;;  %v2079_v47 = vadd.f32 %v1385_v43, %v886_v44 }
 0xaf6   :  { %v887_v48 = vmul.f32 %v1384_v41, %v881_v46  ;;  %1528 = vmatprep.mubr.msk.f32.mxu0 %vm2185_vm1, %v2079_v47  ;;  %vm2200_vm1 = vmmov %vm2169_vm0 }
 0xaf8   :  { %v2083_v49 = vadd.f32 %v1385_v43, %v887_v48 }
 0xafa   :  { %1529 = vmatmul.mubr.msk.f32.vlgmr.msra.gmra.mrb[8].mxu0 %vm2186_vm2, %v2083_v49  ;;  %vm2201_vm2 = vmmov %vm2169_vm0 }
 0xbcd   :  { %v1530_v51 = vpop.f32.mrb[8].mxu0 }
 0xbce   :  { %v982_v52 = vadd.f32 %v1530_v51, %v1386_v50  ;;  %v976_v53 = vpop.f32.mrb[9].mxu0 }
 0xbcf   :  { %v977_v54 = vadd.f32 %v1386_v50, %v976_v53 }
 0xbd0   :  { %989 = vrot.lane.b32.xlu1 %v982_v52, %s1871_s4 }
 0xbd1   :  { %987 = vrot.lane.b32.xlu0 %v977_v54, %s1871_s4  ;;  %1539 = vmatprep.mubr.msk.f32.mxu1 %vm2187_vm8, %v977_v54  ;;  %v2090_v34 = vpack.i.bf16 %v982_v52, %v977_v54  ;;  %vm2202_vm8 = vmmov %vm2169_vm0 }
 0xbd4   :  { %1667 = vrot.lane.b32.xlu1 %v2090_v34, %s1872_s26 }
 0xc42   :  { %v990_v31 = vpop.permute.xlu1 %989 }
 0xc43   :  { %v988_v55 = vpop.permute.xlu0 %987 }
 0xc44   :  { %v1671_v56 = vpack.i.bf16 %v990_v31, %v988_v55 }
 0xc46   :  { %v1668_v57 = vpop.permute.xlu1 %1667  ;;  %1672 = vrot.lane.b32.xlu1 %v1671_v56, %s1872_s26 }
 0xc47   :  { %v1670_v58 = vunpack.i.h.bf16 %v1668_v57  ;;  %v1669_v59 = vunpack.i.l.bf16 %v1668_v57 }
 0xc49   :  { %v1611_v60 = vpack.c.bf16 %v1670_v58, %v1669_v59 }
 0xc4b   :  { %1613 = vmatprep.subr.msk.bf16.mxu1 %vm2188_vm9, %v1611_v60 }
 0xc4c   :  { %1616 = vmatpush3.bf16.xpose.msk.msra.mxu1 %vm2188_vm9, %v1611_v60 }
 0xcb8   :  { %v1673_v61 = vpop.permute.xlu1 %1672 }
 0xcb9   :  { %v1675_v62 = vunpack.i.h.bf16 %v1673_v61  ;;  %v1674_v63 = vunpack.i.l.bf16 %v1673_v61 }
 0xcbb   :  { %v1617_v2 = vpack.c.bf16 %v1675_v62, %v1674_v63 }
 0xcbd   :  { %1619 = vmatprep.subr.msk.bf16.mxu1 %vm2188_vm9, %v1617_v2 }
 0xcbe   :  { %1622 = vmatpush3.bf16.xpose.msk.msra.mxu1 %vm2188_vm9, %v1617_v2  ;;  %vm2203_vm9 = vmmov %vm2190_vm4 }
 0xcc5   :  { %1540 = vmatmul.mubr.msk.f32.vlgmr.msra.gmra.mrb[6].mxu1 %vm2189_vm11, %v982_v52  ;;  %vm2204_vm11 = vmmov %vm2190_vm4 }
 0xcc6   :  { %1542 = vmatprep.mubr.msk.f32.mxu1 %vm2190_vm4, %v988_v55  ;;  %vm2205_vm4 = vmmov %vm2169_vm0 }
 0xcc9   :  { %1543 = vmatmul.mubr.msk.f32.gmra.mrb[8].mxu1 %vm2191_vm5, %v990_v31  ;;  %vm2206_vm5 = vmmov %vm2169_vm0 }
 0xd98   :  { %v1541_v3 = vpop.f32.mrb[6].mxu1 }
 0xd99   :  { %v1087_v4 = vadd.f32 %v1541_v3, %v2038_v0  ;;  %v1081_v5 = vpop.f32.mrb[7].mxu1 }
 0xd9a   :  { %v1082_v6 = vadd.f32 %v1081_v5, %v2040_v1 }
 0xd9b   :  { %v1103_v8 = vsel %vm2192_vm6, %v1087_v4, -inf  ;;  %vm2207_vm6 = vmmov %vm2169_vm0 }
 0xd9c   :  { %1104 = vmax.xlane.f32.xlu1 %v1103_v8  ;;  %v1544_v9 = vpop.f32.mrb[8].mxu1  ;;  %v1100_v11 = vsel %vm2193_vm7, %v1082_v6, -inf  ;;  %vm2208_vm7 = vmmov %vm2169_vm0 }
 0xd9d   :  { %v1091_v38 = vpop.f32.mrb[9].mxu1  ;;  %1101 = vmax.xlane.f32.xlu0 %v1100_v11  ;;  %v1097_v13 = vadd.f32 %v1544_v9, %v2049_v10 }
 0xd9e   :  { %v1092_v12 = vadd.f32 %v1091_v38, %v2046_v7 }
 0xd9f   :  { %v1109_v0 = vsel %vm2195_vm12, %v1097_v13, -inf  ;;  %vm2210_vm12 = vmmov %vm2169_vm0 }
 0xda0   :  { %v1106_v14 = vsel %vm2194_vm10, %v1092_v12, -inf  ;;  %vm2209_vm10 = vmmov %vm2169_vm0 }
 0xda1   :  { %1107 = vmax.xlane.f32.xlu0 %v1106_v14 }
 0xda5   :  { %1110 = vmax.xlane.f32.xlu0 %v1109_v0 }
 0xe29   :  { %v1105_v15 = vpop.xlane.xlu1 %1104 }
 0xe2a   :  { %v1113_v1 = vsub.f32 %v1087_v4, %v1105_v15  ;;  %v1102_v16 = vpop.xlane.xlu0 %1101 }
 0xe2b   :  { %v1112_v17 = vsub.f32 %v1082_v6, %v1102_v16 }
 0xe2c   :  { %v1118_v18 = vmul.f32 1.442695, %v1113_v1 }
 0xe2d   :  { %v1116_v19 = vmul.f32 1.442695, %v1112_v17 }
 0xe2e   :  { %1714 = vpow2.f32 %v1118_v18  ;;  %v1108_v20 = vpop.xlane.xlu0 %1107 }
 0xe2f   :  { %1716 = vpow2.f32 %v1116_v19  ;;  %v1114_v23 = vsub.f32 %v1092_v12, %v1108_v20 }
 0xe31   :  { %v1120_v24 = vmul.f32 1.442695, %v1114_v23  ;;  %v1401_v23 = vld [vmem:[#allocation10 + $0x9] ss:$0 sm:$0xff] }
 0xe32   :  { %v1111_v7 = vpop.xlane.xlu0 %1110 }
 0xe33   :  { %1718 = vpow2.f32 %v1120_v24  ;;  %v1115_v10 = vsub.f32 %v1097_v13, %v1111_v7  ;;  %v1402_v7 = vld [vmem:[#allocation10 + $0xb] ss:$0 sm:$0xff] }
 0xe35   :  { %v1122_v21 = vmul.f32 1.442695, %v1115_v10 }
 0xe37   :  { %1720 = vpow2.f32 %v1122_v21 }
 0xe38   :  { %v1715_v26 = vpop.eup %1714 }
 0xe39   :  { %v1717_v27 = vpop.eup %1716  ;;  %v1127_v22 = vsel %vm2196_vm13, %v1715_v26, 0.0  ;;  %vm2211_vm13 = vmmov %vm2169_vm0 }
 0xe3a   :  { %1128 = vadd.xlane.f32.xlu1 %v1127_v22  ;;  %v1124_v25 = vsel %vm2197_vm14, %v1717_v27, 0.0  ;;  %vm2212_vm14 = vmmov %vm2169_vm0 }
 0xe3b   :  { %1125 = vadd.xlane.f32.xlu0 %v1124_v25 }
 0xe3d   :  { %v1719_v28 = vpop.eup %1718 }
 0xe3e   :  { %v1130_v29 = vsel %vm2198_vm15, %v1719_v28, 0.0  ;;  %vm1325_vm15 = vcmask 1040384  }
 0xe3f   :  { %1131 = vadd.xlane.f32.xlu0 %v1130_v29 }
 0xe41   :  { %v1721_v30 = vpop.eup %1720 }
 0xe42   :  { %v1133_v32 = vsel %vm2199_vm3, %v1721_v30, 0.0  ;;  %vm1329_vm3 = vcmask 254976  }
 0xe43   :  { %1134 = vadd.xlane.f32.xlu1 %v1133_v32 }
 0xe54   :  { %1682 = vrot.lane.b32.xlu1 %v1671_v56, %s1876_s28 }
 0xe55   :  { %1677 = vrot.lane.b32.xlu0 %v2090_v34, %s1876_s28 }
 0xec7   :  { %v1129_v35 = vpop.xlane.xlu1 %1128 }
 0xec8   :  { %v1126_v33 = vpop.xlane.xlu0 %1125 }
 0xec9   :  { %1722 = vrcp.f32 %v1126_v33 }
 0xeca   :  { %1724 = vrcp.f32 %v1129_v35 }
 0xecc   :  { %v1132_v36 = vpop.xlane.xlu0 %1131 }
 0xecd   :  { %1726 = vrcp.f32 %v1132_v36 }
 0xed0   :  { %v1135_v37 = vpop.xlane.xlu1 %1134  ;;  %v1678_v39 = vpop.permute.xlu0 %1677 }
 0xed1   :  { %v1680_v40 = vunpack.i.h.bf16 %v1678_v39  ;;  %v1679_v41 = vunpack.i.l.bf16 %v1678_v39  ;;  %1728 = vrcp.f32 %v1135_v37 }
 0xed3   :  { %v1723_v42 = vpop.eup %1722  ;;  %v1623_v43 = vpack.c.bf16 %v1680_v40, %v1679_v41 }
 0xed4   :  { %v1683_v44 = vpop.permute.xlu1 %1682  ;;  %v1144_v45 = vmul.f32 %v1723_v42, %v1717_v27  ;;  %v1725_v51 = vpop.eup %1724 }
 0xed5   :  { %v1685_v46 = vunpack.i.h.bf16 %v1683_v44  ;;  %v1684_v48 = vunpack.i.l.bf16 %v1683_v44  ;;  %1624 = vmatprep.subr.bf16.mxu0 %v1623_v43  ;;  %v1145_v53 = vmul.f32 %v1725_v51, %v1715_v26 }
 0xed6   :  { %1626 = vmatpush3.bf16.msra.mxu0 %v1623_v43  ;;  %1553 = vmatprep.mubr.msk.f32.mxu0 %vm2169_vm0, %v1144_v45 }
 0xed7   :  { %v1627_v50 = vpack.c.bf16 %v1685_v46, %v1684_v48  ;;  %v1727_v52 = vpop.eup %1726 }
 0xed8   :  { %v1146_v34 = vmul.f32 %v1727_v52, %v1719_v28 }
 0xed9   :  { %1628 = vmatprep.subr.bf16.mxu0 %v1627_v50 }
 0xeda   :  { %1630 = vmatpush3.bf16.msra.mxu0 %v1627_v50 }
 0xedb   :  { %v1729_v54 = vpop.eup %1728 }
 0xedc   :  { %v1147_v31 = vmul.f32 %v1729_v54, %v1721_v30 }
 0xedd   :  { %1554 = vmatmul.mubr.msk.f32.vlgmr.msra.gmra.mrb[10].mxu0 %vm2200_vm1, %v1145_v53 }
 0xede   :  { %1556 = vmatprep.mubr.msk.f32.mxu0 %vm2201_vm2, %v1146_v34 }
 0xee1   :  { %1557 = vmatmul.mubr.msk.f32.gmra.mrb[12].mxu0 %vm2202_vm8, %v1147_v31 }
 0xfb0   :  { %v1555_v55 = vpop.f32.mrb[10].mxu0 }
 0xfb1   :  { %v1238_v56 = vpop.f32.mrb[11].mxu0 }
 0xfb4   :  { %v1558_v57 = vpop.f32.mrb[12].mxu0 }
 0xfb5   :  { %v1248_v58 = vpop.f32.mrb[13].mxu0 }
 0xfb6   :  { %1259 = vrot.lane.b32.xlu1 %v1248_v58, %s1877_s29 }
 0xfba   :  { %1261 = vrot.lane.b32.xlu1 %v1558_v57, %s1877_s29 }
0x1028   :  { %v1260_v59 = vpop.permute.xlu1 %1259 }
0x1029   :  { %v1265_v60 = vsel %vm2203_vm9, %v1238_v56, %v1260_v59 }
0x102a   :  { %v1267_v61 = vmax.f32 %v1265_v60, 0.0 }
0x102c   :  { %v1262_v62 = vpop.permute.xlu1 %1261  ;;  %v1269_v63 = vadd.f32 %v1267_v61, %v2079_v47 }
0x102d   :  { %v1266_v2 = vsel %vm2204_vm11, %v1555_v55, %v1262_v62 }
0x102e   :  { %v1268_v3 = vmax.f32 %v1266_v2, 0.0  ;;  %v1273_v4 = vsel %vm2205_vm4, %v1269_v63, 0.0 }
0x102f   :  { %1274 = vadd.xlane.f32.xlu0 %v1273_v4 }
0x1030   :  { %v1270_v5 = vadd.f32 %v1268_v3, %v2083_v49 }
0x1032   :  { %v1276_v6 = vsel %vm2206_vm5, %v1270_v5, 0.0 }
0x1033   :  { %1277 = vadd.xlane.f32.xlu1 %v1276_v6 }
0x10bc   :  { %v1275_v8 = vpop.xlane.xlu0 %1274 }
0x10bd   :  { %v1279_v9 = vmul.f32 0.03125, %v1275_v8 }
0x10bf   :  { %v1281_v11 = vsub.f32 %v1269_v63, %v1279_v9 }
0x10c0   :  { %v1278_v38 = vpop.xlane.xlu1 %1277 }
0x10c1   :  { %v1280_v12 = vmul.f32 0.03125, %v1278_v38  ;;  %v1283_v13 = vmul.f32 %v1281_v11, %v1281_v11 }
0x10c3   :  { %v1282_v14 = vsub.f32 %v1270_v5, %v1280_v12  ;;  %v1285_v47 = vsel %vm2207_vm6, %v1283_v13, 0.0 }
0x10c4   :  { %1286 = vadd.xlane.f32.xlu0 %v1285_v47 }
0x10c5   :  { %v1284_v0 = vmul.f32 %v1282_v14, %v1282_v14 }
0x10c7   :  { %v1288_v15 = vsel %vm2208_vm7, %v1284_v0, 0.0 }
0x10c8   :  { %1289 = vadd.xlane.f32.xlu0 %v1288_v15 }
0x1151   :  { %v1287_v1 = vpop.xlane.xlu0 %1286 }
0x1152   :  { %v1291_v16 = vmul.f32 0.03125, %v1287_v1 }
0x1154   :  { %v1293_v49 = vadd.f32 1e-05, %v1291_v16 }
0x1155   :  { %v1290_v17 = vpop.xlane.xlu0 %1289 }
0x1156   :  { %1730 = vrsqrt.f32 %v1293_v49  ;;  %v1292_v18 = vmul.f32 0.03125, %v1290_v17 }
0x1158   :  { %v1294_v19 = vadd.f32 1e-05, %v1292_v18 }
0x115a   :  { %1732 = vrsqrt.f32 %v1294_v19 }
0x1160   :  { %v1731_v20 = vpop.eup %1730 }
0x1161   :  { %v1297_v24 = vmul.f32 %v1731_v20, %v1281_v11 }
0x1163   :  { %v1303_v10 = vmul.f32 %v1401_v23, %v1297_v24 }
0x1164   :  { %v1733_v21 = vpop.eup %1732 }
0x1165   :  { %v1298_v26 = vmul.f32 %v1733_v21, %v1282_v14  ;;  %v1309_v27 = vadd.f32 %v1402_v7, %v1303_v10 }
0x1167   :  { %v1304_v22 = vmul.f32 %v1401_v23, %v1298_v26  ;;  %v1311_v25 = vsel %vm2209_vm10, %v1309_v27, -inf  ;;  %1327 = vst.msk [vmem:[#allocation12] sm:$0xff] %vm2210_vm12, %v1309_v27 }
0x1168   :  { %v1312_v28 = vrot.slane %v1311_v25, 4 }
0x1169   :  { %v1310_v29 = vadd.f32 %v1402_v7, %v1304_v22 }
0x116a   :  { %v1313_v30 = vmax.f32 %v1311_v25, %v1312_v28 }
0x116b   :  { %v1318_v32 = vsel %vm2211_vm13, %v1310_v29, -inf  ;;  %1328 = vst.msk [vmem:[#allocation12 + $0x8] sm:$0xff] %vm2212_vm14, %v1310_v29 }
0x116c   :  { %v1314_v33 = vrot.slane %v1313_v30, 2  ;;  %v1319_v35 = vrot.slane %v1318_v32, 4 }
0x116e   :  { %v1315_v36 = vmax.f32 %v1313_v30, %v1314_v33  ;;  %v1320_v37 = vmax.f32 %v1318_v32, %v1319_v35 }
0x1170   :  { %v1321_v39 = vrot.slane %v1320_v37, 2  ;;  %v1316_v40 = vrot.slane %v1315_v36, 1 }
0x1172   :  { %v1322_v41 = vmax.f32 %v1320_v37, %v1321_v39  ;;  %v1317_v43 = vmax.f32 %v1315_v36, %v1316_v40 }
0x1174   :  { %v1323_v42 = vrot.slane %v1322_v41, 1 }
0x1176   :  { %v1324_v44 = vmax.f32 %v1322_v41, %v1323_v42 }
0x1178   :  { %v1326_v45 = vsel %vm1325_vm15, %v1317_v43, %v1324_v44 }
0x1179   :  { %1330 = vst.msk [vmem:[#allocation12 + $0x10] sm:$0x3] %vm1329_vm3, %v1326_v45 }
0x117a   :  { %1843 = shalt.err (!%p1840_p11)
}
0x117b   :  { %s1844_s12 = scalar_lea.hbm %s2159_s5, 384 }
0x117c   :  { %p1845_p12 = scmp.ne.s32.totalorder %s2159_s5, %s1844_s12  ;;  %p1848_p13 = scmp.lt.u32.totalorder %s1844_s12, %s2159_s5 }
0x117e   :  { %p1850_p0 = pnand %p1848_p13, %p1845_p12 }
0x1180   :  { %1853 = shalt.err (!%p1850_p0)
}
0x1181   :  { %1342 = dma.vmem_to_hbm [thread:$0]  %s1337_s8, 384, %s2159_s5, [#allocation4], %s1866_s30, %s1866_s30, %s1867_s6  }
0x1182   :  { %1862 = dma.done.wait [#allocation4], 384  }
0x1183   :  { %1863 = vsyncadd [#allocation4], 4294966912 }
0x1184   :  { %1346 = vsyncpa [#allocation3], 1 }
0x1185   :  { %1347 = vsyncpa [#allocation8], 1 }
0x1186   :  { %1348 = vsyncpa [#allocation11], 1 }
0x1187   :  { %1349 = vsyncpa [#allocation4], 1 }
0x1188   :  { %1350 = vsyncpa [#allocation5], 1 }

</bundles_post_ra>
